<compile_context>
chip_gen: v7x
topology: tpu7x:2x2x1
jax: 0.10.0
libtpu: 0.0.40
codegen_flags: <defaults>
</compile_context>

<pallas_src>
import functools
import math

import jax
import jax.numpy as jnp
from jax.experimental import pallas as pl
from jax.experimental.pallas import tpu as pltpu


# ---------------------------------------------------------------------------
# Pallas kernel
# ---------------------------------------------------------------------------
def _encoder_layer_kernel(
        x_ref, pe_ref,
        qq_w_ref, s_kv_w_ref, p_kv_w_ref,
        s_wo_ref, p_wo_ref, ff_w1_ref, ff_w2_ref, vec_ref,
        out_ref,
        s_kv_ref, p_kv_ref, ctx_ref,
        *, num_heads, seq_len, tq, compute_dtype, approx_recip):
    f32 = jnp.float32
    cd = compute_dtype

    d_model = x_ref.shape[-1]
    s_pad = x_ref.shape[1]
    hdk2 = qq_w_ref.shape[-1]          # 2 * H*d_k (both branches fused)
    hdk = hdk2 // 2
    hdkv = s_kv_w_ref.shape[-1]        # H*d_k + H*d_v
    hdv = hdkv - hdk
    d_ff = ff_w1_ref.shape[-1]
    d_k = hdk // num_heads
    d_v = hdv // num_heads

    vec = vec_ref[...]                 # (11, Wmax) packed biases / LN params

    def row(i, w):                     # packed-vector row i, first w lanes
        return vec[i:i + 1, :w]

    def mm(a, w):                      # MXU matmul, f32 accumulate
        return jnp.dot(a.astype(cd), w.astype(cd), preferred_element_type=f32)

    def softmax_rows(s):
        s = s - jnp.max(s, axis=-1, keepdims=True)
        p = jnp.exp(s)
        denom = jnp.sum(p, axis=-1, keepdims=True)
        if approx_recip:
            return p * pl.reciprocal(denom, approx=True)
        return p / denom

    def layernorm(v, g, b, eps=1e-5):
        mu = jnp.mean(v, axis=-1, keepdims=True)
        c = v - mu
        var = jnp.mean(c * c, axis=-1, keepdims=True)
        return c * jax.lax.rsqrt(var + eps) * g + b

    qi = pl.program_id(1)

    # ---- K/V projections: computed ONCE per batch row (query-tile 0) and
    # cached in persistent VMEM scratch; reused for every q tile (q axis is
    # "arbitrary" so iteration over q is sequential within a batch row).
    @pl.when(qi == 0)
    def _():
        s_kv_ref[...] = (mm(x_ref[0], s_kv_w_ref[...]) + row(1, hdkv)).astype(cd)
        p_kv_ref[...] = (mm(pe_ref[0], p_kv_w_ref[...]) + row(2, hdkv)).astype(cd)

    # ---- Query tile sliced from the resident full-sequence block (no extra
    # per-tile x input stream / DMA).
    q_start = pl.multiple_of(qi * tq, tq)
    xq = x_ref[0, pl.ds(q_start, tq), :]                     # (tq, d_model) f32

    # ---- Fused Q projection for BOTH branches (1/sqrt(d_k) pre-folded).
    qq = mm(xq, qq_w_ref[...]) + row(0, hdk2)                # (tq, 2*H*d_k) f32

    # Padded key positions (sequence padded up to a sublane multiple) -> -inf.
    if seq_len < s_pad:
        key_valid = jax.lax.broadcasted_iota(jnp.int32, (tq, s_pad), 1) < seq_len
    else:
        key_valid = None

    def attend(q_all, kv_ref, wo_ref, bo):
        # Per-head scores / softmax / context; each head's context is written
        # into its lane slice of a (tq, H*d_v) scratch so the output
        # projection becomes ONE d_model-deep matmul.
        # NOTE: static unroll with direct ref stores (instead of fori_loop +
        # dynamic lane-offset slicing) — non-128-aligned dynamic lane slices
        # would force XLU relayouts / may not lower; the ref stores still
        # bound per-head value liveness.
        for h in range(num_heads):
            qh = q_all[:, h * d_k:(h + 1) * d_k]
            kh = kv_ref[:, h * d_k:(h + 1) * d_k]                  # cached (cd)
            vh = kv_ref[:, hdk + h * d_v: hdk + (h + 1) * d_v]     # cached (cd)
            s = jax.lax.dot_general(qh.astype(cd), kh,
                                    (((1,), (1,)), ((), ())),
                                    preferred_element_type=f32)    # (tq, S_pad)
            if key_valid is not None:
                s = jnp.where(key_valid, s, -1e30)
            p = softmax_rows(s)
            ctx_ref[:, h * d_v:(h + 1) * d_v] = jnp.dot(
                p.astype(cd), vh, preferred_element_type=f32).astype(cd)
        # Per-head wo was folded into the concat projection host-side ->
        # one (H*d_v, d_model) matmul over the concatenated contexts.
        return jnp.dot(ctx_ref[...], wo_ref[...],
                       preferred_element_type=f32) + bo

    self_attn = attend(qq[:, :hdk], s_kv_ref, s_wo_ref, row(3, d_model))
    pe_attn = attend(qq[:, hdk:], p_kv_ref, p_wo_ref, row(4, d_model))

    # eval-mode get_ratios() -> [0.5, 0.5]; dropout = identity.
    fused = 0.5 * self_attn + 0.5 * pe_attn
    ln1 = layernorm(fused + xq, row(5, d_model), row(6, d_model))

    hid = jnp.maximum(mm(ln1, ff_w1_ref[...]) + row(7, d_ff), 0.0)
    ff = mm(hid, ff_w2_ref[...]) + row(8, d_model)
    out_ref[0] = layernorm(ff + ln1, row(9, d_model),
                           row(10, d_model)).astype(out_ref.dtype)


# ---------------------------------------------------------------------------
# Host-side parameter fusion / packing
# ---------------------------------------------------------------------------
def _fuse_branch(wq, bq, wk, bk, wv, bv, wo, bo, wcat, bcat):
    H, _, d_k = wq.shape
    d_v = wv.shape[-1]
    d_model = wcat.shape[-1]
    inv_scale = 1.0 / math.sqrt(d_k)

    def cat_heads(w):                 # [H, D_in, d] -> [D_in, H*d]
        return jnp.transpose(w, (1, 0, 2)).reshape(w.shape[1], H * w.shape[2])

    wq_cat = cat_heads(wq) * inv_scale           # fold 1/sqrt(d_k) into Q proj
    bq_cat = bq.reshape(1, H * d_k) * inv_scale
    wk_cat = cat_heads(wk)
    bk_cat = bk.reshape(1, H * d_k)
    wv_cat = cat_heads(wv)
    bv_cat = bv.reshape(1, H * d_v)

    # Fold the per-head output projection into the concat projection:
    #   concat_h(ctx_h @ wo[h] + bo[h]) @ wcat + bcat
    #     = concat_h(ctx_h) @ wo_fused + (bcat + sum_h bo[h] @ wcat_h)
    wcat_blocks = wcat.reshape(H, d_v, d_model)
    wo_fused = jnp.einsum("hvu,hum->hvm", wo, wcat_blocks).reshape(H * d_v, d_model)
    bo_fused = bcat + jnp.einsum("hou,hum->om", bo, wcat_blocks)

    return wq_cat, bq_cat, wk_cat, bk_cat, wv_cat, bv_cat, wo_fused, bo_fused


def prepare_params(params, *, compute_dtype=jnp.float32):
    (s_wq, s_bq, s_wk, s_bk, s_wv, s_bv, s_wo, s_bo, s_wcat, s_bcat,
     p_wq, p_bq, p_wk, p_bk, p_wv, p_bv, p_wo, p_bo, p_wcat, p_bcat,
     ln1_g, ln1_b, ff_w1, ff_b1, ff_w2, ff_b2, ln2_g, ln2_b) = params

    (s_wq_c, s_bq_c, s_wk_c, s_bk_c, s_wv_c, s_bv_c, s_wo_f, s_bo_f) = _fuse_branch(
        s_wq, s_bq, s_wk, s_bk, s_wv, s_bv, s_wo, s_bo, s_wcat, s_bcat)
    (p_wq_c, p_bq_c, p_wk_c, p_bk_c, p_wv_c, p_bv_c, p_wo_f, p_bo_f) = _fuse_branch(
        p_wq, p_bq, p_wk, p_bk, p_wv, p_bv, p_wo, p_bo, p_wcat, p_bcat)

    # One Q projection for both branches (same xq input).
    qq_w = jnp.concatenate([s_wq_c, p_wq_c], axis=1)
    bqq = jnp.concatenate([s_bq_c, p_bq_c], axis=1)
    # One fused K|V projection per branch (same kv input within a branch).
    s_kv_w = jnp.concatenate([s_wk_c, s_wv_c], axis=1)
    s_bkv = jnp.concatenate([s_bk_c, s_bv_c], axis=1)
    p_kv_w = jnp.concatenate([p_wk_c, p_wv_c], axis=1)
    p_bkv = jnp.concatenate([p_bk_c, p_bv_c], axis=1)

    # Pack all small vectors (biases + LN affine) into ONE (11, Wmax) f32 array.
    rows = [bqq, s_bkv, p_bkv, s_bo_f, p_bo_f,
            ln1_g, ln1_b, ff_b1, ff_b2, ln2_g, ln2_b]
    w_max = max(r.shape[-1] for r in rows)
    rows = [jnp.pad(r.reshape(1, -1).astype(jnp.float32),
                    ((0, 0), (0, w_max - r.shape[-1]))) for r in rows]
    vec = jnp.concatenate(rows, axis=0)

    weights = [w.astype(compute_dtype)
               for w in (qq_w, s_kv_w, p_kv_w, s_wo_f, p_wo_f, ff_w1, ff_w2)]
    return tuple(weights) + (vec,)


# ---------------------------------------------------------------------------
# Wrapper
# ---------------------------------------------------------------------------
def _round_up(n, m):
    return ((n + m - 1) // m) * m


def encoder_layer_pallas(x, pe_out, params, num_heads, *,
                         compute_dtype=jnp.float32, approx_recip=False,
                         q_tile=256, vmem_limit_bytes=48 * 1024 * 1024,
                         single_buffer_weights=False):
    B, S, D = x.shape
    d_pe = pe_out.shape[-1]
    prep = prepare_params(params, compute_dtype=compute_dtype)

    # Pad the sequence to a sublane multiple; padded KEY positions are masked
    # inside the kernel, padded QUERY rows are sliced off the output.
    s_pad = max(_round_up(S, 8), 8)
    if s_pad != S:
        x = jnp.pad(x, ((0, 0), (0, s_pad - S), (0, 0)))
        pe_out = jnp.pad(pe_out, ((0, 0), (0, s_pad - S), (0, 0)))

    # Query-tile size: largest candidate dividing the padded sequence.
    # v7x (64 MiB VMEM): keep q_tile <= 256; v5e/v6e (128 MiB physical): can
    # raise q_tile to 512 and vmem_limit_bytes to ~96-112 MiB.
    tq = s_pad
    for cand in (q_tile, 512, 256, 128, 64, 32, 16, 8):
        if cand <= s_pad and s_pad % cand == 0:
            tq = cand
            break

    grid = (B, s_pad // tq)
    hdkv = prep[1].shape[-1]          # H*d_k + H*d_v
    hdv = prep[3].shape[0]            # H*d_v

    def weight_spec(a):
        kwargs = {}
        if single_buffer_weights:
            # v7x: drop the unused second pipeline buffer of every
            # grid-resident weight block (constant index map).
            kwargs["pipeline_mode"] = pl.Buffered(1)
        return pl.BlockSpec(a.shape, lambda b, q: (0, 0), **kwargs)

    in_specs = [
        pl.BlockSpec((1, s_pad, D), lambda b, q: (b, 0, 0)),      # x (q + kv)
        pl.BlockSpec((1, s_pad, d_pe), lambda b, q: (b, 0, 0)),   # pe (kv)
    ] + [weight_spec(w) for w in prep]

    kernel = functools.partial(_encoder_layer_kernel,
                               num_heads=num_heads, seq_len=S, tq=tq,
                               compute_dtype=compute_dtype,
                               approx_recip=approx_recip)

    out = pl.pallas_call(
        kernel,
        out_shape=jax.ShapeDtypeStruct((B, s_pad, D), jnp.float32),
        grid_spec=pltpu.PrefetchScalarGridSpec(
            num_scalar_prefetch=0,
            grid=grid,
            in_specs=in_specs,
            out_specs=pl.BlockSpec((1, tq, D), lambda b, q: (b, q, 0)),
            scratch_shapes=[
                pltpu.VMEM((s_pad, hdkv), compute_dtype),   # cached self K|V
                pltpu.VMEM((s_pad, hdkv), compute_dtype),   # cached PE   K|V
                pltpu.VMEM((tq, hdv), compute_dtype),       # per-tile ctx concat
            ]),
        compiler_params=pltpu.CompilerParams(
            # q axis must be sequential ("arbitrary") for the K/V cache;
            # batch stays "parallel" for megacore / dual-TC sharding.
            dimension_semantics=("parallel", "arbitrary"),
            vmem_limit_bytes=vmem_limit_bytes,
        ),
    )(x, pe_out, *prep)

    return out[:, :S, :] if s_pad != S else out


# ---------------------------------------------------------------------------
# Deterministic parameter init (mirrors nn.Linear + xavier_uniform_)
# ---------------------------------------------------------------------------
def _linear_params(key, d_in, d_out):
    k1, k2 = jax.random.split(key)
    bw = math.sqrt(6.0 / (d_in + d_out))            # xavier_uniform_
    w = jax.random.uniform(k1, (d_in, d_out), jnp.float32, -bw, bw)
    bb = 1.0 / math.sqrt(d_in)                      # default nn.Linear bias init
    b = jax.random.uniform(k2, (1, d_out), jnp.float32, -bb, bb)
    return w, b


def make_params(key, d_model, d_ff, num_heads, d_pe):
    d_k = d_model // num_heads
    d_v = d_model // num_heads
    keys = iter(jax.random.split(key, 64))

    def stacked_heads(d_q_in, d_kv_in):
        wq, bq, wk, bk, wv, bv, wo, bo = [], [], [], [], [], [], [], []
        for _ in range(num_heads):
            w, b = _linear_params(next(keys), d_q_in, d_k);  wq.append(w); bq.append(b)
            w, b = _linear_params(next(keys), d_kv_in, d_k); wk.append(w); bk.append(b)
            w, b = _linear_params(next(keys), d_kv_in, d_v); wv.append(w); bv.append(b)
            w, b = _linear_params(next(keys), d_v, d_v);     wo.append(w); bo.append(b)
        stack = lambda xs: jnp.stack(xs, axis=0)
        wcat, bcat = _linear_params(next(keys), num_heads * d_v, d_model)
        return [stack(wq), stack(bq), stack(wk), stack(bk),
                stack(wv), stack(bv), stack(wo), stack(bo), wcat, bcat]

    self_p = stacked_heads(d_model, d_model)
    pe_p = stacked_heads(d_model, d_pe)

    ln1_g = jnp.ones((1, d_model), jnp.float32)
    ln1_b = jnp.zeros((1, d_model), jnp.float32)
    ff_w1, ff_b1 = _linear_params(next(keys), d_model, d_ff)
    ff_w2, ff_b2 = _linear_params(next(keys), d_ff, d_model)
    ln2_g = jnp.ones((1, d_model), jnp.float32)
    ln2_b = jnp.zeros((1, d_model), jnp.float32)

    return tuple(self_p + pe_p +
                 [ln1_g, ln1_b, ff_w1, ff_b1, ff_w2, ff_b2, ln2_g, ln2_b])


# ---------------------------------------------------------------------------
# Pure-JAX reference (same eval-mode math) for correctness checks
# ---------------------------------------------------------------------------
def encoder_layer_ref(x, pe_out, params):
    (s_wq, s_bq, s_wk, s_bk, s_wv, s_bv, s_wo, s_bo, s_wcat, s_bcat,
     p_wq, p_bq, p_wk, p_bk, p_wv, p_bv, p_wo, p_bo, p_wcat, p_bcat,
     ln1_g, ln1_b, ff_w1, ff_b1, ff_w2, ff_b2, ln2_g, ln2_b) = params

    def mha(xq, kv, wq, bq, wk, bk, wv, bv, wo, bo, wcat, bcat):
        H = wq.shape[0]
        outs = []
        for h in range(H):
            q = xq @ wq[h] + bq[h]
            k = kv @ wk[h] + bk[h]
            v = kv @ wv[h] + bv[h]
            att = jnp.einsum("bqd,bkd->bqk", q, k) / (q.shape[-1] ** 0.5)
            p = jax.nn.softmax(att, axis=-1)
            ctx = jnp.einsum("bqk,bkd->bqd", p, v)
            outs.append(ctx @ wo[h] + bo[h])
        return jnp.concatenate(outs, axis=-1) @ wcat + bcat

    def ln(v, g, b, eps=1e-5):
        mu = jnp.mean(v, -1, keepdims=True)
        var = jnp.mean((v - mu) ** 2, -1, keepdims=True)
        return (v - mu) / jnp.sqrt(var + eps) * g + b

    sa = mha(x, x, s_wq, s_bq, s_wk, s_bk, s_wv, s_bv, s_wo, s_bo, s_wcat, s_bcat)
    pa = mha(x, pe_out, p_wq, p_bq, p_wk, p_bk, p_wv, p_bv, p_wo, p_bo, p_wcat, p_bcat)
    fused = 0.5 * sa + 0.5 * pa
    l1 = ln(fused + x, ln1_g, ln1_b)
    ff = jnp.maximum(l1 @ ff_w1 + ff_b1, 0.0) @ ff_w2 + ff_b2
    return ln(ff + l1, ln2_g, ln2_b)


if __name__ == "__main__":
    B, S, D_MODEL, D_FF, NUM_HEADS, D_PE = 2, 8, 32, 64, 4, 16

    key = jax.random.PRNGKey(0)
    kx, kpe, kp, kx2, kpe2 = jax.random.split(key, 5)
    x = jax.random.normal(kx, (B, S, D_MODEL), jnp.float32)
    pe_out = jax.random.normal(kpe, (B, S, D_PE), jnp.float32)
    params = make_params(kp, D_MODEL, D_FF, NUM_HEADS, D_PE)

    ref = encoder_layer_ref(x, pe_out, params)

    # Exact path: f32 matmul inputs, exact softmax normalization.
    out_f32 = encoder_layer_pallas(x, pe_out, params, NUM_HEADS,
                                   compute_dtype=jnp.float32,
                                   approx_recip=False)
    out_f32 = jax.block_until_ready(out_f32)
    assert out_f32.shape == (B, S, D_MODEL)
    assert jnp.allclose(out_f32, ref, atol=1e-4, rtol=1e-4), "f32 mismatch vs reference"

    # bf16 MXU fast path (valid on v5e / v6e / v7x): bf16 matmul inputs with
    # f32 accumulation, approx reciprocal for softmax; LN/softmax stay f32.
    out_bf16 = encoder_layer_pallas(x, pe_out, params, NUM_HEADS,
                                    compute_dtype=jnp.bfloat16,
                                    approx_recip=True)
    out_bf16 = jax.block_until_ready(out_bf16)
    assert jnp.allclose(out_bf16, ref, atol=1e-1, rtol=1e-1), "bf16 mismatch vs reference"

    # Non-divisible sequence length -> host-side pad + in-kernel key masking.
    S2 = 10
    x2 = jax.random.normal(kx2, (B, S2, D_MODEL), jnp.float32)
    pe2 = jax.random.normal(kpe2, (B, S2, D_PE), jnp.float32)
    ref2 = encoder_layer_ref(x2, pe2, params)
    out2 = encoder_layer_pallas(x2, pe2, params, NUM_HEADS,
                                compute_dtype=jnp.float32, approx_recip=False)
    out2 = jax.block_until_ready(out2)
    assert out2.shape == (B, S2, D_MODEL)
    assert jnp.allclose(out2, ref2, atol=1e-4, rtol=1e-4), "padded-seq mismatch vs reference"

    # TODO(synk): optional fp8 weight path for v7x and Buffered(1) default-on
    # are left behind kwargs (single_buffer_weights) to keep the default path
    # maximally portable.
    print("KERNEL_OK")
</pallas_src>

<mosaic_0001>
module attributes {stable_mosaic.version = 11 : i64} {
  func.func @_encoder_layer_kernel(%arg0: i32, %arg1: i32, %arg2: memref<1x8x32xf32, #tpu.memory_space<vmem>>, %arg3: memref<1x8x16xf32, #tpu.memory_space<vmem>>, %arg4: memref<32x64xf32, #tpu.memory_space<vmem>>, %arg5: memref<32x64xf32, #tpu.memory_space<vmem>>, %arg6: memref<16x64xf32, #tpu.memory_space<vmem>>, %arg7: memref<32x32xf32, #tpu.memory_space<vmem>>, %arg8: memref<32x32xf32, #tpu.memory_space<vmem>>, %arg9: memref<32x64xf32, #tpu.memory_space<vmem>>, %arg10: memref<64x32xf32, #tpu.memory_space<vmem>>, %arg11: memref<11x64xf32, #tpu.memory_space<vmem>>, %arg12: memref<1x8x32xf32, #tpu.memory_space<vmem>>, %arg13: memref<8x64xf32, #tpu.memory_space<vmem>>, %arg14: memref<8x64xf32, #tpu.memory_space<vmem>>, %arg15: memref<8x32xf32, #tpu.memory_space<vmem>>) attributes {dimension_semantics = [#tpu.dimension_semantics<parallel>, #tpu.dimension_semantics<arbitrary>], iteration_bounds = array<i64: 2, 1>, scalar_prefetch = 0 : i64, scratch_operands = 3 : i64, tpu.core_type = #tpu.core_type<tc>, window_params = [{transform_indices = @transform_0, window_bounds = array<i64: 1, 8, 32>}, {transform_indices = @transform_1, window_bounds = array<i64: 1, 8, 16>}, {pipeline_mode = #tpu.pipeline_mode<synchronous>, transform_indices = @transform_2, window_bounds = array<i64: 32, 64>}, {pipeline_mode = #tpu.pipeline_mode<synchronous>, transform_indices = @transform_3, window_bounds = array<i64: 32, 64>}, {pipeline_mode = #tpu.pipeline_mode<synchronous>, transform_indices = @transform_4, window_bounds = array<i64: 16, 64>}, {pipeline_mode = #tpu.pipeline_mode<synchronous>, transform_indices = @transform_5, window_bounds = array<i64: 32, 32>}, {pipeline_mode = #tpu.pipeline_mode<synchronous>, transform_indices = @transform_6, window_bounds = array<i64: 32, 32>}, {pipeline_mode = #tpu.pipeline_mode<synchronous>, transform_indices = @transform_7, window_bounds = array<i64: 32, 64>}, {pipeline_mode = #tpu.pipeline_mode<synchronous>, transform_indices = @transform_8, window_bounds = array<i64: 64, 32>}, {pipeline_mode = #tpu.pipeline_mode<synchronous>, transform_indices = @transform_9, window_bounds = array<i64: 11, 64>}, {transform_indices = @transform_10, window_bounds = array<i64: 1, 8, 32>}]} {
    %c0 = arith.constant 0 : index
    %c0_0 = arith.constant 0 : index
    %0 = vector.load %arg11[%c0, %c0_0] : memref<11x64xf32, #tpu.memory_space<vmem>>, vector<11x64xf32>
    %c0_i32 = arith.constant 0 : i32
    %1 = arith.cmpi eq, %arg1, %c0_i32 : i32
    %2 = arith.extui %1 : i1 to i32
    %c0_i32_1 = arith.constant 0 : i32
    %3 = arith.cmpi ne, %2, %c0_i32_1 : i32
    scf.if %3 {
      %c0_111 = arith.constant 0 : index
      %c0_112 = arith.constant 0 : index
      %c0_113 = arith.constant 0 : index
      %214 = vector.load %arg2[%c0_111, %c0_112, %c0_113] : memref<1x8x32xf32, #tpu.memory_space<vmem>>, vector<1x8x32xf32>
      %215 = vector.shape_cast %214 : vector<1x8x32xf32> to vector<8x32xf32>
      %c0_114 = arith.constant 0 : index
      %c0_115 = arith.constant 0 : index
      %216 = vector.load %arg5[%c0_114, %c0_115] : memref<32x64xf32, #tpu.memory_space<vmem>>, vector<32x64xf32>
      %cst_116 = arith.constant dense<0.000000e+00> : vector<8x64xf32>
      %217 = tpu.matmul %215, %216, %cst_116 {dimension_numbers = #tpu.dot_dimension_numbers<[1], [0], [0], [1], [0, 0, 1, 1], [], []>} : vector<8x32xf32>, vector<32x64xf32>, vector<8x64xf32> -> vector<8x64xf32>
      %218 = vector.extract_strided_slice %0 {offsets = [1, 0], sizes = [1, 64], strides = [1, 1]} : vector<11x64xf32> to vector<1x64xf32>
      %219 = vector.broadcast %218 : vector<1x64xf32> to vector<8x64xf32>
      %220 = arith.addf %217, %219 : vector<8x64xf32>
      %c0_117 = arith.constant 0 : index
      %c0_118 = arith.constant 0 : index
      %221 = vector.load %arg13[%c0_117, %c0_118] : memref<8x64xf32, #tpu.memory_space<vmem>>, vector<8x64xf32>
      tpu.vector_store %arg13[%c0_117, %c0_118], %220 {strides = array<i32>} : memref<8x64xf32, #tpu.memory_space<vmem>>, vector<8x64xf32>,
      %c0_119 = arith.constant 0 : index
      %c0_120 = arith.constant 0 : index
      %c0_121 = arith.constant 0 : index
      %222 = vector.load %arg3[%c0_119, %c0_120, %c0_121] : memref<1x8x16xf32, #tpu.memory_space<vmem>>, vector<1x8x16xf32>
      %223 = vector.shape_cast %222 : vector<1x8x16xf32> to vector<8x16xf32>
      %c0_122 = arith.constant 0 : index
      %c0_123 = arith.constant 0 : index
      %224 = vector.load %arg6[%c0_122, %c0_123] : memref<16x64xf32, #tpu.memory_space<vmem>>, vector<16x64xf32>
      %cst_124 = arith.constant dense<0.000000e+00> : vector<8x64xf32>
      %225 = tpu.matmul %223, %224, %cst_124 {dimension_numbers = #tpu.dot_dimension_numbers<[1], [0], [0], [1], [0, 0, 1, 1], [], []>} : vector<8x16xf32>, vector<16x64xf32>, vector<8x64xf32> -> vector<8x64xf32>
      %226 = vector.extract_strided_slice %0 {offsets = [2, 0], sizes = [1, 64], strides = [1, 1]} : vector<11x64xf32> to vector<1x64xf32>
      %227 = vector.broadcast %226 : vector<1x64xf32> to vector<8x64xf32>
      %228 = arith.addf %225, %227 : vector<8x64xf32>
      %c0_125 = arith.constant 0 : index
      %c0_126 = arith.constant 0 : index
      %229 = vector.load %arg14[%c0_125, %c0_126] : memref<8x64xf32, #tpu.memory_space<vmem>>, vector<8x64xf32>
      tpu.vector_store %arg14[%c0_125, %c0_126], %228 {strides = array<i32>} : memref<8x64xf32, #tpu.memory_space<vmem>>, vector<8x64xf32>,
    } else {
    }
    %c8_i32 = arith.constant 8 : i32
    %4 = arith.muli %arg1, %c8_i32 : i32
    %5 = tpu.assume_multiple %4, 8 : i32
    %c0_2 = arith.constant 0 : index
    %6 = arith.index_cast %5 : i32 to index
    %c0_3 = arith.constant 0 : index
    %7 = vector.load %arg2[%c0_2, %6, %c0_3] : memref<1x8x32xf32, #tpu.memory_space<vmem>>, vector<1x8x32xf32>
    %8 = vector.shape_cast %7 : vector<1x8x32xf32> to vector<8x32xf32>
    %c0_4 = arith.constant 0 : index
    %c0_5 = arith.constant 0 : index
    %9 = vector.load %arg4[%c0_4, %c0_5] : memref<32x64xf32, #tpu.memory_space<vmem>>, vector<32x64xf32>
    %cst = arith.constant dense<0.000000e+00> : vector<8x64xf32>
    %10 = tpu.matmul %8, %9, %cst {dimension_numbers = #tpu.dot_dimension_numbers<[1], [0], [0], [1], [0, 0, 1, 1], [], []>} : vector<8x32xf32>, vector<32x64xf32>, vector<8x64xf32> -> vector<8x64xf32>
    %11 = vector.extract_strided_slice %0 {offsets = [0, 0], sizes = [1, 64], strides = [1, 1]} : vector<11x64xf32> to vector<1x64xf32>
    %12 = vector.broadcast %11 : vector<1x64xf32> to vector<8x64xf32>
    %13 = arith.addf %10, %12 : vector<8x64xf32>
    %14 = vector.extract_strided_slice %13 {offsets = [0, 0], sizes = [8, 32], strides = [1, 1]} : vector<8x64xf32> to vector<8x32xf32>
    %15 = vector.extract_strided_slice %0 {offsets = [3, 0], sizes = [1, 32], strides = [1, 1]} : vector<11x64xf32> to vector<1x32xf32>
    %16 = vector.extract_strided_slice %14 {offsets = [0, 0], sizes = [8, 8], strides = [1, 1]} : vector<8x32xf32> to vector<8x8xf32>
    %c0_6 = arith.constant 0 : index
    %c0_7 = arith.constant 0 : index
    %17 = vector.load %arg13[%c0_6, %c0_7] : memref<8x64xf32, #tpu.memory_space<vmem>>, vector<8x8xf32>
    %c0_8 = arith.constant 0 : index
    %c32 = arith.constant 32 : index
    %18 = vector.load %arg13[%c0_8, %c32] : memref<8x64xf32, #tpu.memory_space<vmem>>, vector<8x8xf32>
    %cst_9 = arith.constant dense<0.000000e+00> : vector<8x8xf32>
    %19 = tpu.matmul %16, %17, %cst_9 {dimension_numbers = #tpu.dot_dimension_numbers<[1], [1], [0], [0], [0, 0, 1, 0], [], []>} : vector<8x8xf32>, vector<8x8xf32>, vector<8x8xf32> -> vector<8x8xf32>
    %cst_10 = arith.constant dense<0xFF800000> : vector<8xf32>
    %20 = vector.multi_reduction <maximumf>, %19, %cst_10 [1] : vector<8x8xf32> to vector<8xf32>
    %21 = vector.shape_cast %20 : vector<8xf32> to vector<8x1xf32>
    %22 = vector.broadcast %21 : vector<8x1xf32> to vector<8x8xf32>
    %23 = arith.subf %19, %22 : vector<8x8xf32>
    %24 = math.exp %23 : vector<8x8xf32>
    %cst_11 = arith.constant dense<0.000000e+00> : vector<8xf32>
    %25 = vector.multi_reduction <add>, %24, %cst_11 [1] : vector<8x8xf32> to vector<8xf32>
    %26 = vector.shape_cast %25 : vector<8xf32> to vector<8x1xf32>
    %27 = vector.broadcast %26 : vector<8x1xf32> to vector<8x8xf32>
    %28 = arith.divf %24, %27 : vector<8x8xf32>
    %cst_12 = arith.constant dense<0.000000e+00> : vector<8x8xf32>
    %29 = tpu.matmul %28, %18, %cst_12 {dimension_numbers = #tpu.dot_dimension_numbers<[1], [0], [0], [1], [0, 0, 1, 1], [], []>} : vector<8x8xf32>, vector<8x8xf32>, vector<8x8xf32> -> vector<8x8xf32>
    %c0_13 = arith.constant 0 : index
    %c0_14 = arith.constant 0 : index
    %30 = vector.load %arg15[%c0_13, %c0_14] : memref<8x32xf32, #tpu.memory_space<vmem>>, vector<8x8xf32>
    tpu.vector_store %arg15[%c0_13, %c0_14], %29 {strides = array<i32>} : memref<8x32xf32, #tpu.memory_space<vmem>>, vector<8x8xf32>,
    %31 = vector.extract_strided_slice %14 {offsets = [0, 8], sizes = [8, 8], strides = [1, 1]} : vector<8x32xf32> to vector<8x8xf32>
    %c0_15 = arith.constant 0 : index
    %c8 = arith.constant 8 : index
    %32 = vector.load %arg13[%c0_15, %c8] : memref<8x64xf32, #tpu.memory_space<vmem>>, vector<8x8xf32>
    %c0_16 = arith.constant 0 : index
    %c40 = arith.constant 40 : index
    %33 = vector.load %arg13[%c0_16, %c40] : memref<8x64xf32, #tpu.memory_space<vmem>>, vector<8x8xf32>
    %cst_17 = arith.constant dense<0.000000e+00> : vector<8x8xf32>
    %34 = tpu.matmul %31, %32, %cst_17 {dimension_numbers = #tpu.dot_dimension_numbers<[1], [1], [0], [0], [0, 0, 1, 0], [], []>} : vector<8x8xf32>, vector<8x8xf32>, vector<8x8xf32> -> vector<8x8xf32>
    %cst_18 = arith.constant dense<0xFF800000> : vector<8xf32>
    %35 = vector.multi_reduction <maximumf>, %34, %cst_18 [1] : vector<8x8xf32> to vector<8xf32>
    %36 = vector.shape_cast %35 : vector<8xf32> to vector<8x1xf32>
    %37 = vector.broadcast %36 : vector<8x1xf32> to vector<8x8xf32>
    %38 = arith.subf %34, %37 : vector<8x8xf32>
    %39 = math.exp %38 : vector<8x8xf32>
    %cst_19 = arith.constant dense<0.000000e+00> : vector<8xf32>
    %40 = vector.multi_reduction <add>, %39, %cst_19 [1] : vector<8x8xf32> to vector<8xf32>
    %41 = vector.shape_cast %40 : vector<8xf32> to vector<8x1xf32>
    %42 = vector.broadcast %41 : vector<8x1xf32> to vector<8x8xf32>
    %43 = arith.divf %39, %42 : vector<8x8xf32>
    %cst_20 = arith.constant dense<0.000000e+00> : vector<8x8xf32>
    %44 = tpu.matmul %43, %33, %cst_20 {dimension_numbers = #tpu.dot_dimension_numbers<[1], [0], [0], [1], [0, 0, 1, 1], [], []>} : vector<8x8xf32>, vector<8x8xf32>, vector<8x8xf32> -> vector<8x8xf32>
    %c0_21 = arith.constant 0 : index
    %c8_22 = arith.constant 8 : index
    %45 = vector.load %arg15[%c0_21, %c8_22] : memref<8x32xf32, #tpu.memory_space<vmem>>, vector<8x8xf32>
    tpu.vector_store %arg15[%c0_21, %c8_22], %44 {strides = array<i32>} : memref<8x32xf32, #tpu.memory_space<vmem>>, vector<8x8xf32>,
    %46 = vector.extract_strided_slice %14 {offsets = [0, 16], sizes = [8, 8], strides = [1, 1]} : vector<8x32xf32> to vector<8x8xf32>
    %c0_23 = arith.constant 0 : index
    %c16 = arith.constant 16 : index
    %47 = vector.load %arg13[%c0_23, %c16] : memref<8x64xf32, #tpu.memory_space<vmem>>, vector<8x8xf32>
    %c0_24 = arith.constant 0 : index
    %c48 = arith.constant 48 : index
    %48 = vector.load %arg13[%c0_24, %c48] : memref<8x64xf32, #tpu.memory_space<vmem>>, vector<8x8xf32>
    %cst_25 = arith.constant dense<0.000000e+00> : vector<8x8xf32>
    %49 = tpu.matmul %46, %47, %cst_25 {dimension_numbers = #tpu.dot_dimension_numbers<[1], [1], [0], [0], [0, 0, 1, 0], [], []>} : vector<8x8xf32>, vector<8x8xf32>, vector<8x8xf32> -> vector<8x8xf32>
    %cst_26 = arith.constant dense<0xFF800000> : vector<8xf32>
    %50 = vector.multi_reduction <maximumf>, %49, %cst_26 [1] : vector<8x8xf32> to vector<8xf32>
    %51 = vector.shape_cast %50 : vector<8xf32> to vector<8x1xf32>
    %52 = vector.broadcast %51 : vector<8x1xf32> to vector<8x8xf32>
    %53 = arith.subf %49, %52 : vector<8x8xf32>
    %54 = math.exp %53 : vector<8x8xf32>
    %cst_27 = arith.constant dense<0.000000e+00> : vector<8xf32>
    %55 = vector.multi_reduction <add>, %54, %cst_27 [1] : vector<8x8xf32> to vector<8xf32>
    %56 = vector.shape_cast %55 : vector<8xf32> to vector<8x1xf32>
    %57 = vector.broadcast %56 : vector<8x1xf32> to vector<8x8xf32>
    %58 = arith.divf %54, %57 : vector<8x8xf32>
    %cst_28 = arith.constant dense<0.000000e+00> : vector<8x8xf32>
    %59 = tpu.matmul %58, %48, %cst_28 {dimension_numbers = #tpu.dot_dimension_numbers<[1], [0], [0], [1], [0, 0, 1, 1], [], []>} : vector<8x8xf32>, vector<8x8xf32>, vector<8x8xf32> -> vector<8x8xf32>
    %c0_29 = arith.constant 0 : index
    %c16_30 = arith.constant 16 : index
    %60 = vector.load %arg15[%c0_29, %c16_30] : memref<8x32xf32, #tpu.memory_space<vmem>>, vector<8x8xf32>
    tpu.vector_store %arg15[%c0_29, %c16_30], %59 {strides = array<i32>} : memref<8x32xf32, #tpu.memory_space<vmem>>, vector<8x8xf32>,
    %61 = vector.extract_strided_slice %14 {offsets = [0, 24], sizes = [8, 8], strides = [1, 1]} : vector<8x32xf32> to vector<8x8xf32>
    %c0_31 = arith.constant 0 : index
    %c24 = arith.constant 24 : index
    %62 = vector.load %arg13[%c0_31, %c24] : memref<8x64xf32, #tpu.memory_space<vmem>>, vector<8x8xf32>
    %c0_32 = arith.constant 0 : index
    %c56 = arith.constant 56 : index
    %63 = vector.load %arg13[%c0_32, %c56] : memref<8x64xf32, #tpu.memory_space<vmem>>, vector<8x8xf32>
    %cst_33 = arith.constant dense<0.000000e+00> : vector<8x8xf32>
    %64 = tpu.matmul %61, %62, %cst_33 {dimension_numbers = #tpu.dot_dimension_numbers<[1], [1], [0], [0], [0, 0, 1, 0], [], []>} : vector<8x8xf32>, vector<8x8xf32>, vector<8x8xf32> -> vector<8x8xf32>
    %cst_34 = arith.constant dense<0xFF800000> : vector<8xf32>
    %65 = vector.multi_reduction <maximumf>, %64, %cst_34 [1] : vector<8x8xf32> to vector<8xf32>
    %66 = vector.shape_cast %65 : vector<8xf32> to vector<8x1xf32>
    %67 = vector.broadcast %66 : vector<8x1xf32> to vector<8x8xf32>
    %68 = arith.subf %64, %67 : vector<8x8xf32>
    %69 = math.exp %68 : vector<8x8xf32>
    %cst_35 = arith.constant dense<0.000000e+00> : vector<8xf32>
    %70 = vector.multi_reduction <add>, %69, %cst_35 [1] : vector<8x8xf32> to vector<8xf32>
    %71 = vector.shape_cast %70 : vector<8xf32> to vector<8x1xf32>
    %72 = vector.broadcast %71 : vector<8x1xf32> to vector<8x8xf32>
    %73 = arith.divf %69, %72 : vector<8x8xf32>
    %cst_36 = arith.constant dense<0.000000e+00> : vector<8x8xf32>
    %74 = tpu.matmul %73, %63, %cst_36 {dimension_numbers = #tpu.dot_dimension_numbers<[1], [0], [0], [1], [0, 0, 1, 1], [], []>} : vector<8x8xf32>, vector<8x8xf32>, vector<8x8xf32> -> vector<8x8xf32>
    %c0_37 = arith.constant 0 : index
    %c24_38 = arith.constant 24 : index
    %75 = vector.load %arg15[%c0_37, %c24_38] : memref<8x32xf32, #tpu.memory_space<vmem>>, vector<8x8xf32>
    tpu.vector_store %arg15[%c0_37, %c24_38], %74 {strides = array<i32>} : memref<8x32xf32, #tpu.memory_space<vmem>>, vector<8x8xf32>,
    %c0_39 = arith.constant 0 : index
    %c0_40 = arith.constant 0 : index
    %76 = vector.load %arg15[%c0_39, %c0_40] : memref<8x32xf32, #tpu.memory_space<vmem>>, vector<8x32xf32>
    %c0_41 = arith.constant 0 : index
    %c0_42 = arith.constant 0 : index
    %77 = vector.load %arg7[%c0_41, %c0_42] : memref<32x32xf32, #tpu.memory_space<vmem>>, vector<32x32xf32>
    %cst_43 = arith.constant dense<0.000000e+00> : vector<8x32xf32>
    %78 = tpu.matmul %76, %77, %cst_43 {dimension_numbers = #tpu.dot_dimension_numbers<[1], [0], [0], [1], [0, 0, 1, 1], [], []>} : vector<8x32xf32>, vector<32x32xf32>, vector<8x32xf32> -> vector<8x32xf32>
    %79 = vector.broadcast %15 : vector<1x32xf32> to vector<8x32xf32>
    %80 = arith.addf %78, %79 : vector<8x32xf32>
    %81 = vector.extract_strided_slice %13 {offsets = [0, 32], sizes = [8, 32], strides = [1, 1]} : vector<8x64xf32> to vector<8x32xf32>
    %82 = vector.extract_strided_slice %0 {offsets = [4, 0], sizes = [1, 32], strides = [1, 1]} : vector<11x64xf32> to vector<1x32xf32>
    %83 = vector.extract_strided_slice %81 {offsets = [0, 0], sizes = [8, 8], strides = [1, 1]} : vector<8x32xf32> to vector<8x8xf32>
    %c0_44 = arith.constant 0 : index
    %c0_45 = arith.constant 0 : index
    %84 = vector.load %arg14[%c0_44, %c0_45] : memref<8x64xf32, #tpu.memory_space<vmem>>, vector<8x8xf32>
    %c0_46 = arith.constant 0 : index
    %c32_47 = arith.constant 32 : index
    %85 = vector.load %arg14[%c0_46, %c32_47] : memref<8x64xf32, #tpu.memory_space<vmem>>, vector<8x8xf32>
    %cst_48 = arith.constant dense<0.000000e+00> : vector<8x8xf32>
    %86 = tpu.matmul %83, %84, %cst_48 {dimension_numbers = #tpu.dot_dimension_numbers<[1], [1], [0], [0], [0, 0, 1, 0], [], []>} : vector<8x8xf32>, vector<8x8xf32>, vector<8x8xf32> -> vector<8x8xf32>
    %cst_49 = arith.constant dense<0xFF800000> : vector<8xf32>
    %87 = vector.multi_reduction <maximumf>, %86, %cst_49 [1] : vector<8x8xf32> to vector<8xf32>
    %88 = vector.shape_cast %87 : vector<8xf32> to vector<8x1xf32>
    %89 = vector.broadcast %88 : vector<8x1xf32> to vector<8x8xf32>
    %90 = arith.subf %86, %89 : vector<8x8xf32>
    %91 = math.exp %90 : vector<8x8xf32>
    %cst_50 = arith.constant dense<0.000000e+00> : vector<8xf32>
    %92 = vector.multi_reduction <add>, %91, %cst_50 [1] : vector<8x8xf32> to vector<8xf32>
    %93 = vector.shape_cast %92 : vector<8xf32> to vector<8x1xf32>
    %94 = vector.broadcast %93 : vector<8x1xf32> to vector<8x8xf32>
    %95 = arith.divf %91, %94 : vector<8x8xf32>
    %cst_51 = arith.constant dense<0.000000e+00> : vector<8x8xf32>
    %96 = tpu.matmul %95, %85, %cst_51 {dimension_numbers = #tpu.dot_dimension_numbers<[1], [0], [0], [1], [0, 0, 1, 1], [], []>} : vector<8x8xf32>, vector<8x8xf32>, vector<8x8xf32> -> vector<8x8xf32>
    %c0_52 = arith.constant 0 : index
    %c0_53 = arith.constant 0 : index
    %97 = vector.load %arg15[%c0_52, %c0_53] : memref<8x32xf32, #tpu.memory_space<vmem>>, vector<8x8xf32>
    tpu.vector_store %arg15[%c0_52, %c0_53], %96 {strides = array<i32>} : memref<8x32xf32, #tpu.memory_space<vmem>>, vector<8x8xf32>,
    %98 = vector.extract_strided_slice %81 {offsets = [0, 8], sizes = [8, 8], strides = [1, 1]} : vector<8x32xf32> to vector<8x8xf32>
    %c0_54 = arith.constant 0 : index
    %c8_55 = arith.constant 8 : index
    %99 = vector.load %arg14[%c0_54, %c8_55] : memref<8x64xf32, #tpu.memory_space<vmem>>, vector<8x8xf32>
    %c0_56 = arith.constant 0 : index
    %c40_57 = arith.constant 40 : index
    %100 = vector.load %arg14[%c0_56, %c40_57] : memref<8x64xf32, #tpu.memory_space<vmem>>, vector<8x8xf32>
    %cst_58 = arith.constant dense<0.000000e+00> : vector<8x8xf32>
    %101 = tpu.matmul %98, %99, %cst_58 {dimension_numbers = #tpu.dot_dimension_numbers<[1], [1], [0], [0], [0, 0, 1, 0], [], []>} : vector<8x8xf32>, vector<8x8xf32>, vector<8x8xf32> -> vector<8x8xf32>
    %cst_59 = arith.constant dense<0xFF800000> : vector<8xf32>
    %102 = vector.multi_reduction <maximumf>, %101, %cst_59 [1] : vector<8x8xf32> to vector<8xf32>
    %103 = vector.shape_cast %102 : vector<8xf32> to vector<8x1xf32>
    %104 = vector.broadcast %103 : vector<8x1xf32> to vector<8x8xf32>
    %105 = arith.subf %101, %104 : vector<8x8xf32>
    %106 = math.exp %105 : vector<8x8xf32>
    %cst_60 = arith.constant dense<0.000000e+00> : vector<8xf32>
    %107 = vector.multi_reduction <add>, %106, %cst_60 [1] : vector<8x8xf32> to vector<8xf32>
    %108 = vector.shape_cast %107 : vector<8xf32> to vector<8x1xf32>
    %109 = vector.broadcast %108 : vector<8x1xf32> to vector<8x8xf32>
    %110 = arith.divf %106, %109 : vector<8x8xf32>
    %cst_61 = arith.constant dense<0.000000e+00> : vector<8x8xf32>
    %111 = tpu.matmul %110, %100, %cst_61 {dimension_numbers = #tpu.dot_dimension_numbers<[1], [0], [0], [1], [0, 0, 1, 1], [], []>} : vector<8x8xf32>, vector<8x8xf32>, vector<8x8xf32> -> vector<8x8xf32>
    %c0_62 = arith.constant 0 : index
    %c8_63 = arith.constant 8 : index
    %112 = vector.load %arg15[%c0_62, %c8_63] : memref<8x32xf32, #tpu.memory_space<vmem>>, vector<8x8xf32>
    tpu.vector_store %arg15[%c0_62, %c8_63], %111 {strides = array<i32>} : memref<8x32xf32, #tpu.memory_space<vmem>>, vector<8x8xf32>,
    %113 = vector.extract_strided_slice %81 {offsets = [0, 16], sizes = [8, 8], strides = [1, 1]} : vector<8x32xf32> to vector<8x8xf32>
    %c0_64 = arith.constant 0 : index
    %c16_65 = arith.constant 16 : index
    %114 = vector.load %arg14[%c0_64, %c16_65] : memref<8x64xf32, #tpu.memory_space<vmem>>, vector<8x8xf32>
    %c0_66 = arith.constant 0 : index
    %c48_67 = arith.constant 48 : index
    %115 = vector.load %arg14[%c0_66, %c48_67] : memref<8x64xf32, #tpu.memory_space<vmem>>, vector<8x8xf32>
    %cst_68 = arith.constant dense<0.000000e+00> : vector<8x8xf32>
    %116 = tpu.matmul %113, %114, %cst_68 {dimension_numbers = #tpu.dot_dimension_numbers<[1], [1], [0], [0], [0, 0, 1, 0], [], []>} : vector<8x8xf32>, vector<8x8xf32>, vector<8x8xf32> -> vector<8x8xf32>
    %cst_69 = arith.constant dense<0xFF800000> : vector<8xf32>
    %117 = vector.multi_reduction <maximumf>, %116, %cst_69 [1] : vector<8x8xf32> to vector<8xf32>
    %118 = vector.shape_cast %117 : vector<8xf32> to vector<8x1xf32>
    %119 = vector.broadcast %118 : vector<8x1xf32> to vector<8x8xf32>
    %120 = arith.subf %116, %119 : vector<8x8xf32>
    %121 = math.exp %120 : vector<8x8xf32>
    %cst_70 = arith.constant dense<0.000000e+00> : vector<8xf32>
    %122 = vector.multi_reduction <add>, %121, %cst_70 [1] : vector<8x8xf32> to vector<8xf32>
    %123 = vector.shape_cast %122 : vector<8xf32> to vector<8x1xf32>
    %124 = vector.broadcast %123 : vector<8x1xf32> to vector<8x8xf32>
    %125 = arith.divf %121, %124 : vector<8x8xf32>
    %cst_71 = arith.constant dense<0.000000e+00> : vector<8x8xf32>
    %126 = tpu.matmul %125, %115, %cst_71 {dimension_numbers = #tpu.dot_dimension_numbers<[1], [0], [0], [1], [0, 0, 1, 1], [], []>} : vector<8x8xf32>, vector<8x8xf32>, vector<8x8xf32> -> vector<8x8xf32>
    %c0_72 = arith.constant 0 : index
    %c16_73 = arith.constant 16 : index
    %127 = vector.load %arg15[%c0_72, %c16_73] : memref<8x32xf32, #tpu.memory_space<vmem>>, vector<8x8xf32>
    tpu.vector_store %arg15[%c0_72, %c16_73], %126 {strides = array<i32>} : memref<8x32xf32, #tpu.memory_space<vmem>>, vector<8x8xf32>,
    %128 = vector.extract_strided_slice %81 {offsets = [0, 24], sizes = [8, 8], strides = [1, 1]} : vector<8x32xf32> to vector<8x8xf32>
    %c0_74 = arith.constant 0 : index
    %c24_75 = arith.constant 24 : index
    %129 = vector.load %arg14[%c0_74, %c24_75] : memref<8x64xf32, #tpu.memory_space<vmem>>, vector<8x8xf32>
    %c0_76 = arith.constant 0 : index
    %c56_77 = arith.constant 56 : index
    %130 = vector.load %arg14[%c0_76, %c56_77] : memref<8x64xf32, #tpu.memory_space<vmem>>, vector<8x8xf32>
    %cst_78 = arith.constant dense<0.000000e+00> : vector<8x8xf32>
    %131 = tpu.matmul %128, %129, %cst_78 {dimension_numbers = #tpu.dot_dimension_numbers<[1], [1], [0], [0], [0, 0, 1, 0], [], []>} : vector<8x8xf32>, vector<8x8xf32>, vector<8x8xf32> -> vector<8x8xf32>
    %cst_79 = arith.constant dense<0xFF800000> : vector<8xf32>
    %132 = vector.multi_reduction <maximumf>, %131, %cst_79 [1] : vector<8x8xf32> to vector<8xf32>
    %133 = vector.shape_cast %132 : vector<8xf32> to vector<8x1xf32>
    %134 = vector.broadcast %133 : vector<8x1xf32> to vector<8x8xf32>
    %135 = arith.subf %131, %134 : vector<8x8xf32>
    %136 = math.exp %135 : vector<8x8xf32>
    %cst_80 = arith.constant dense<0.000000e+00> : vector<8xf32>
    %137 = vector.multi_reduction <add>, %136, %cst_80 [1] : vector<8x8xf32> to vector<8xf32>
    %138 = vector.shape_cast %137 : vector<8xf32> to vector<8x1xf32>
    %139 = vector.broadcast %138 : vector<8x1xf32> to vector<8x8xf32>
    %140 = arith.divf %136, %139 : vector<8x8xf32>
    %cst_81 = arith.constant dense<0.000000e+00> : vector<8x8xf32>
    %141 = tpu.matmul %140, %130, %cst_81 {dimension_numbers = #tpu.dot_dimension_numbers<[1], [0], [0], [1], [0, 0, 1, 1], [], []>} : vector<8x8xf32>, vector<8x8xf32>, vector<8x8xf32> -> vector<8x8xf32>
    %c0_82 = arith.constant 0 : index
    %c24_83 = arith.constant 24 : index
    %142 = vector.load %arg15[%c0_82, %c24_83] : memref<8x32xf32, #tpu.memory_space<vmem>>, vector<8x8xf32>
    tpu.vector_store %arg15[%c0_82, %c24_83], %141 {strides = array<i32>} : memref<8x32xf32, #tpu.memory_space<vmem>>, vector<8x8xf32>,
    %c0_84 = arith.constant 0 : index
    %c0_85 = arith.constant 0 : index
    %143 = vector.load %arg15[%c0_84, %c0_85] : memref<8x32xf32, #tpu.memory_space<vmem>>, vector<8x32xf32>
    %c0_86 = arith.constant 0 : index
    %c0_87 = arith.constant 0 : index
    %144 = vector.load %arg8[%c0_86, %c0_87] : memref<32x32xf32, #tpu.memory_space<vmem>>, vector<32x32xf32>
    %cst_88 = arith.constant dense<0.000000e+00> : vector<8x32xf32>
    %145 = tpu.matmul %143, %144, %cst_88 {dimension_numbers = #tpu.dot_dimension_numbers<[1], [0], [0], [1], [0, 0, 1, 1], [], []>} : vector<8x32xf32>, vector<32x32xf32>, vector<8x32xf32> -> vector<8x32xf32>
    %146 = vector.broadcast %82 : vector<1x32xf32> to vector<8x32xf32>
    %147 = arith.addf %145, %146 : vector<8x32xf32>
    %cst_89 = arith.constant 5.000000e-01 : f32
    %148 = vector.broadcast %cst_89 : f32 to vector<8x32xf32>
    %149 = arith.mulf %148, %80 : vector<8x32xf32>
    %cst_90 = arith.constant 5.000000e-01 : f32
    %150 = vector.broadcast %cst_90 : f32 to vector<8x32xf32>
    %151 = arith.mulf %150, %147 : vector<8x32xf32>
    %152 = arith.addf %149, %151 : vector<8x32xf32>
    %153 = arith.addf %152, %8 : vector<8x32xf32>
    %154 = vector.extract_strided_slice %0 {offsets = [5, 0], sizes = [1, 32], strides = [1, 1]} : vector<11x64xf32> to vector<1x32xf32>
    %155 = vector.extract_strided_slice %0 {offsets = [6, 0], sizes = [1, 32], strides = [1, 1]} : vector<11x64xf32> to vector<1x32xf32>
    %cst_91 = arith.constant dense<0.000000e+00> : vector<8xf32>
    %156 = vector.multi_reduction <add>, %153, %cst_91 [1] : vector<8x32xf32> to vector<8xf32>
    %157 = vector.shape_cast %156 : vector<8xf32> to vector<8x1xf32>
    %cst_92 = arith.constant 3.200000e+01 : f32
    %158 = vector.broadcast %cst_92 : f32 to vector<8x1xf32>
    %159 = arith.divf %157, %158 : vector<8x1xf32>
    %160 = vector.broadcast %159 : vector<8x1xf32> to vector<8x32xf32>
    %161 = arith.subf %153, %160 : vector<8x32xf32>
    %162 = arith.mulf %161, %161 : vector<8x32xf32>
    %cst_93 = arith.constant dense<0.000000e+00> : vector<8xf32>
    %163 = vector.multi_reduction <add>, %162, %cst_93 [1] : vector<8x32xf32> to vector<8xf32>
    %164 = vector.shape_cast %163 : vector<8xf32> to vector<8x1xf32>
    %cst_94 = arith.constant 3.200000e+01 : f32
    %165 = vector.broadcast %cst_94 : f32 to vector<8x1xf32>
    %166 = arith.divf %164, %165 : vector<8x1xf32>
    %cst_95 = arith.constant 9.99999974E-6 : f32
    %167 = vector.broadcast %cst_95 : f32 to vector<8x1xf32>
    %168 = arith.addf %166, %167 : vector<8x1xf32>
    %169 = math.rsqrt %168 : vector<8x1xf32>
    %170 = vector.broadcast %169 : vector<8x1xf32> to vector<8x32xf32>
    %171 = arith.mulf %161, %170 : vector<8x32xf32>
    %172 = vector.broadcast %154 : vector<1x32xf32> to vector<8x32xf32>
    %173 = arith.mulf %171, %172 : vector<8x32xf32>
    %174 = vector.broadcast %155 : vector<1x32xf32> to vector<8x32xf32>
    %175 = arith.addf %173, %174 : vector<8x32xf32>
    %c0_96 = arith.constant 0 : index
    %c0_97 = arith.constant 0 : index
    %176 = vector.load %arg9[%c0_96, %c0_97] : memref<32x64xf32, #tpu.memory_space<vmem>>, vector<32x64xf32>
    %cst_98 = arith.constant dense<0.000000e+00> : vector<8x64xf32>
    %177 = tpu.matmul %175, %176, %cst_98 {dimension_numbers = #tpu.dot_dimension_numbers<[1], [0], [0], [1], [0, 0, 1, 1], [], []>} : vector<8x32xf32>, vector<32x64xf32>, vector<8x64xf32> -> vector<8x64xf32>
    %178 = vector.extract_strided_slice %0 {offsets = [7, 0], sizes = [1, 64], strides = [1, 1]} : vector<11x64xf32> to vector<1x64xf32>
    %179 = vector.broadcast %178 : vector<1x64xf32> to vector<8x64xf32>
    %180 = arith.addf %177, %179 : vector<8x64xf32>
    %cst_99 = arith.constant 0.000000e+00 : f32
    %181 = vector.broadcast %cst_99 : f32 to vector<8x64xf32>
    %182 = arith.maximumf %180, %181 : vector<8x64xf32>
    %c0_100 = arith.constant 0 : index
    %c0_101 = arith.constant 0 : index
    %183 = vector.load %arg10[%c0_100, %c0_101] : memref<64x32xf32, #tpu.memory_space<vmem>>, vector<64x32xf32>
    %cst_102 = arith.constant dense<0.000000e+00> : vector<8x32xf32>
    %184 = tpu.matmul %182, %183, %cst_102 {dimension_numbers = #tpu.dot_dimension_numbers<[1], [0], [0], [1], [0, 0, 1, 1], [], []>} : vector<8x64xf32>, vector<64x32xf32>, vector<8x32xf32> -> vector<8x32xf32>
    %185 = vector.extract_strided_slice %0 {offsets = [8, 0], sizes = [1, 32], strides = [1, 1]} : vector<11x64xf32> to vector<1x32xf32>
    %186 = vector.broadcast %185 : vector<1x32xf32> to vector<8x32xf32>
    %187 = arith.addf %184, %186 : vector<8x32xf32>
    %188 = arith.addf %187, %175 : vector<8x32xf32>
    %189 = vector.extract_strided_slice %0 {offsets = [9, 0], sizes = [1, 32], strides = [1, 1]} : vector<11x64xf32> to vector<1x32xf32>
    %190 = vector.extract_strided_slice %0 {offsets = [10, 0], sizes = [1, 32], strides = [1, 1]} : vector<11x64xf32> to vector<1x32xf32>
    %cst_103 = arith.constant dense<0.000000e+00> : vector<8xf32>
    %191 = vector.multi_reduction <add>, %188, %cst_103 [1] : vector<8x32xf32> to vector<8xf32>
    %192 = vector.shape_cast %191 : vector<8xf32> to vector<8x1xf32>
    %cst_104 = arith.constant 3.200000e+01 : f32
    %193 = vector.broadcast %cst_104 : f32 to vector<8x1xf32>
    %194 = arith.divf %192, %193 : vector<8x1xf32>
    %195 = vector.broadcast %194 : vector<8x1xf32> to vector<8x32xf32>
    %196 = arith.subf %188, %195 : vector<8x32xf32>
    %197 = arith.mulf %196, %196 : vector<8x32xf32>
    %cst_105 = arith.constant dense<0.000000e+00> : vector<8xf32>
    %198 = vector.multi_reduction <add>, %197, %cst_105 [1] : vector<8x32xf32> to vector<8xf32>
    %199 = vector.shape_cast %198 : vector<8xf32> to vector<8x1xf32>
    %cst_106 = arith.constant 3.200000e+01 : f32
    %200 = vector.broadcast %cst_106 : f32 to vector<8x1xf32>
    %201 = arith.divf %199, %200 : vector<8x1xf32>
    %cst_107 = arith.constant 9.99999974E-6 : f32
    %202 = vector.broadcast %cst_107 : f32 to vector<8x1xf32>
    %203 = arith.addf %201, %202 : vector<8x1xf32>
    %204 = math.rsqrt %203 : vector<8x1xf32>
    %205 = vector.broadcast %204 : vector<8x1xf32> to vector<8x32xf32>
    %206 = arith.mulf %196, %205 : vector<8x32xf32>
    %207 = vector.broadcast %189 : vector<1x32xf32> to vector<8x32xf32>
    %208 = arith.mulf %206, %207 : vector<8x32xf32>
    %209 = vector.broadcast %190 : vector<1x32xf32> to vector<8x32xf32>
    %210 = arith.addf %208, %209 : vector<8x32xf32>
    %c0_108 = arith.constant 0 : index
    %c0_109 = arith.constant 0 : index
    %c0_110 = arith.constant 0 : index
    %211 = vector.load %arg12[%c0_108, %c0_109, %c0_110] : memref<1x8x32xf32, #tpu.memory_space<vmem>>, vector<1x8x32xf32>
    %212 = vector.shape_cast %211 : vector<1x8x32xf32> to vector<8x32xf32>
    %213 = vector.shape_cast %210 : vector<8x32xf32> to vector<1x8x32xf32>
    tpu.vector_store %arg12[%c0_108, %c0_109, %c0_110], %213 {strides = array<i32>} : memref<1x8x32xf32, #tpu.memory_space<vmem>>, vector<1x8x32xf32>,
    return
  }
  func.func @transform_0(%arg0: i32, %arg1: i32) -> (i32, i32, i32) {
    %c0_i32 = arith.constant 0 : i32
    %c0_i32_0 = arith.constant 0 : i32
    %c0_i32_1 = arith.constant 0 : i32
    return %arg0, %c0_i32, %c0_i32_0 : i32, i32, i32
  }
  func.func @transform_1(%arg0: i32, %arg1: i32) -> (i32, i32, i32) {
    %c0_i32 = arith.constant 0 : i32
    %c0_i32_0 = arith.constant 0 : i32
    %c0_i32_1 = arith.constant 0 : i32
    return %arg0, %c0_i32, %c0_i32_0 : i32, i32, i32
  }
  func.func @transform_2(%arg0: i32, %arg1: i32) -> (i32, i32) {
    %c0_i32 = arith.constant 0 : i32
    %c0_i32_0 = arith.constant 0 : i32
    %c0_i32_1 = arith.constant 0 : i32
    return %c0_i32, %c0_i32_0 : i32, i32
  }
  func.func @transform_3(%arg0: i32, %arg1: i32) -> (i32, i32) {
    %c0_i32 = arith.constant 0 : i32
    %c0_i32_0 = arith.constant 0 : i32
    %c0_i32_1 = arith.constant 0 : i32
    return %c0_i32, %c0_i32_0 : i32, i32
  }
  func.func @transform_4(%arg0: i32, %arg1: i32) -> (i32, i32) {
    %c0_i32 = arith.constant 0 : i32
    %c0_i32_0 = arith.constant 0 : i32
    %c0_i32_1 = arith.constant 0 : i32
    return %c0_i32, %c0_i32_0 : i32, i32
  }
  func.func @transform_5(%arg0: i32, %arg1: i32) -> (i32, i32) {
    %c0_i32 = arith.constant 0 : i32
    %c0_i32_0 = arith.constant 0 : i32
    %c0_i32_1 = arith.constant 0 : i32
    return %c0_i32, %c0_i32_0 : i32, i32
  }
  func.func @transform_6(%arg0: i32, %arg1: i32) -> (i32, i32) {
    %c0_i32 = arith.constant 0 : i32
    %c0_i32_0 = arith.constant 0 : i32
    %c0_i32_1 = arith.constant 0 : i32
    return %c0_i32, %c0_i32_0 : i32, i32
  }
  func.func @transform_7(%arg0: i32, %arg1: i32) -> (i32, i32) {
    %c0_i32 = arith.constant 0 : i32
    %c0_i32_0 = arith.constant 0 : i32
    %c0_i32_1 = arith.constant 0 : i32
    return %c0_i32, %c0_i32_0 : i32, i32
  }
  func.func @transform_8(%arg0: i32, %arg1: i32) -> (i32, i32) {
    %c0_i32 = arith.constant 0 : i32
    %c0_i32_0 = arith.constant 0 : i32
    %c0_i32_1 = arith.constant 0 : i32
    return %c0_i32, %c0_i32_0 : i32, i32
  }
  func.func @transform_9(%arg0: i32, %arg1: i32) -> (i32, i32) {
    %c0_i32 = arith.constant 0 : i32
    %c0_i32_0 = arith.constant 0 : i32
    %c0_i32_1 = arith.constant 0 : i32
    return %c0_i32, %c0_i32_0 : i32, i32
  }
  func.func @transform_10(%arg0: i32, %arg1: i32) -> (i32, i32, i32) {
    %c0_i32 = arith.constant 0 : i32
    %c0_i32_0 = arith.constant 0 : i32
    return %arg0, %arg1, %c0_i32 : i32, i32, i32
  }
}

</mosaic_0001>

<bundles_post_ra>
// kernel: tpu_custom_call.1
= control target key start
LH: loop header
LB: loop body
LE: loop exit
PB: predicated region body
PF: predicated region fallthrough
CT: control target
= control target key end

     0   :  { %s4045_s0 = inlined_call_operand.hbm [shape: f32[2,8,32], index: 0, kind: input, shape index: {}]   ;;  %s4046_s1 = inlined_call_operand.hbm [shape: f32[2,8,16], index: 1, kind: input, shape index: {}]   ;;  %s4047_s2 = inlined_call_operand.vmem [shape: f32[32,64], index: 2, kind: input, shape index: {}]   ;;  %s4048_s3 = inlined_call_operand.vmem [shape: f32[32,64], index: 3, kind: input, shape index: {}]   ;;  %s4049_s4 = inlined_call_operand.hbm [shape: f32[16,64], index: 4, kind: input, shape index: {}]   ;;  %s4050_s5 = inlined_call_operand.vmem [shape: f32[32,32], index: 5, kind: input, shape index: {}]   ;;  %s4051_s6 = inlined_call_operand.hbm [shape: f32[32,32], index: 6, kind: input, shape index: {}]   ;;  %s4052_s7 = inlined_call_operand.hbm [shape: f32[32,64], index: 7, kind: input, shape index: {}]   ;;  %s4053_s8 = inlined_call_operand.vmem [shape: f32[64,32], index: 8, kind: input, shape index: {}]   ;;  %s4054_s9 = inlined_call_operand.vmem [shape: f32[11,64], index: 9, kind: input, shape index: {}]   ;;  %s4055_s10 = inlined_call_operand.hbm [shape: f32[2,8,32], index: 10, kind: output, shape index: {}]  }
   0x1   :  { %4065 = sst [smem:[#allocation23_spill]] %s4049_s4 }
   0x2   :  { %4066 = sst [smem:[#allocation24_spill]] %s4050_s5 }
   0x3   :  { %4067 = sst [smem:[#allocation25_spill]] %s4051_s6 }
   0x4   :  { %4068 = sst [smem:[#allocation26_spill]] %s4052_s7 }
   0x5   :  { %4069 = sst [smem:[#allocation27_spill]] %s4053_s8 }
   0x6   :  { %4070 = sst [smem:[#allocation28_spill]] %s4055_s10 }
   0x7   :  { %15 = vsyncpa [#allocation6], 0 }
   0x8   :  { %17 = vsyncpa [#allocation6 + $0x1], 0 }
   0x9   :  { %18 = vsyncpa [#allocation9], 0 }
   0xa   :  { %20 = vsyncpa [#allocation9 + $0x1], 0 }
   0xb   :  { %21 = vsyncpa [#allocation12], 0 }
   0xc   :  { %22 = vsyncpa [#allocation7], 0 }
   0xd   :  { %24 = vsyncpa [#allocation7 + $0x1], 0  ;;  %s3419_s13 = smov 0   ;;  %s3421_s14 = smov 0  }
   0xe   :  { %s3423_s15 = smov 0   ;;  %s3425_s16 = smov 0  }
   0xf   :  { %s3427_s17 = smov 0   ;;  %s3429_s18 = smov 0  }
  0x10 LB: > { %4071 = sst [smem:[#allocation20_spill]] %s3321_s13  ;;  %s3450_s19 = sadd.s32 4294967295, %s3341_s18   ;;  %s3341_s18 = sphi %s3429_s18, %s30_s18   ;;  %s3337_s17 = sphi %s3427_s17, %s4104_s17   ;;  %s3333_s16 = sphi %s3425_s16, %s4103_s16   ;;  %s3329_s15 = sphi %s3423_s15, %s4102_s15   ;;  %s3325_s14 = sphi %s3421_s14, %s4101_s14   ;;  %s3321_s13 = sphi %s3419_s13, %s4100_s13  }
  0x11   : > { %4072 = sst [smem:[#allocation21_spill]] %s3333_s16  ;;  %s2627_s20 = sadd.s32 4294967294, %s3341_s18  }
  0x12   : > { %p62_p0 = scmp.ne.s32.totalorder %s3325_s14, %s3321_s13  ;;  %p4058_p1 = scmp.eq.s32.totalorder %s3450_s19, 0 }
  0x13   : > { %p288_p3 = scmp.eq.s32.totalorder %s2627_s20, 1  ;;  %p2628_p5 = scmp.ge.s32.totalorder %s3341_s18, 1 }
  0x14   : > { %p3459_p4 = por %p4058_p1, %p62_p0  ;;  %p295_p7 = scmp.lt.s32.totalorder %s3341_s18, 3 }
  0x15   : > { %p3464_p6 = por %p288_p3, %p62_p0  ;;  %s3343_s24 = smov [#allocation10]  }
  0x16   : > { %s4073_s21 = scalar_select %p3459_p4, 1, 0 }
  0x17   : > { %s4074_s22 = scalar_select %p3464_p6, 1, 0 }
  0x18   : > { %p3469_p8 = pnand %p2628_p5, %p295_p7  ;;  %s313_s25 = sshll.u32 %s3343_s24, 4  ;;  %s3473_s25 = int_to_ptr.vmem [resolvable:$true] %s313_s25 }
  0x19   : > { %4075 = sst [smem:[#allocation22_spill]] %s4074_s22  ;;  %s3344_s27 = smov [#allocation11]  }
  0x1a   : > { %s4076_s23 = scalar_select %p3469_p8, 1, 0 }
  0x1b   : > { %p2972_p9 = pneg %p3469_p8  ;;  %s329_s28 = sshll.u32 %s3344_s27, 4  ;;  %s3484_s28 = int_to_ptr.vmem [resolvable:$true] %s329_s28 }
  0x1c   : > { %s3345_s29 = smov [#allocation13]   ;;  %s4078_s4 = sld [smem:[#allocation23_spill]] }
  0x1d   : > { %p3480_p11 = pnand %p2972_p9, %p4058_p1  ;;  %s3486_s30 = sshll.u32 %s3345_s29, 4  ;;  %s343_s30 = int_to_ptr.vmem [resolvable:$true] %s3486_s30 }
  0x1f   : > { %p3496_p13 = pneg %p3480_p11 }
  0x22   : > { %s3103_s20 = scalar_lea.hbm %s4078_s4, 256 }
  0x23   : > { %p3104_p12 = scmp.ne.s32.totalorder %s4078_s4, %s3103_s20  ;;  %p3110_p5 = scmp.lt.u32.totalorder %s3103_s20, %s4078_s4 }
  0x25   : > { %p3106_p0 = pnand %p3496_p13, %p3104_p12 }
  0x27   : > { %p3107_p3 = pneg %p3106_p0 }
  0x29   : > { %p3112_p7 = pnand %p3110_p5, %p3107_p3 }
  0x2b   : > { %3115 = shalt.err (!%p3112_p7)
}
  0x2c   : > { %s3116_s22 = scalar_lea.vmem %s3473_s25, 256  ;;  %p3124_p2 = scmp.lt.s32.totalorder %s3473_s25, %s3473_s25 }
  0x2d   : > { %p3117_p9 = scmp.ne.s32.totalorder %s3473_s25, %s3116_s22  ;;  %p3125_p6 = scmp.lt.s32.totalorder %s3116_s22, %s3116_s22 }
  0x2f   : > { %p3119_p10 = pnand %p3117_p9, %p3496_p13  ;;  %p3126_p12 = por %p3125_p6, %p3124_p2 }
  0x31   : > { %p3120_p1 = pneg %p3119_p10 }
  0x33   : > { %p3127_p0 = pnand %p3126_p12, %p3120_p1 }
  0x35   : > { %3130 = shalt.err (!%p3127_p0)
}
  0x36   : > { %s3346_s11 = smov 128   ;;  %s3347_s12 = smov 8  }
  0x37   : > { %2975 = dma.hbm_to_vmem [thread:$0]  (!%p3480_p11), %s4078_s4, 256, %s3473_s25, [#allocation9], %s3346_s11, %s3346_s11, %s3347_s12  }
  0x38   : > { %s4080_s6 = sld [smem:[#allocation25_spill]] }
  0x3e   : > { %s3131_s22 = scalar_lea.hbm %s4080_s6, 512 }
  0x3f   : > { %p3132_p1 = scmp.ne.s32.totalorder %s4080_s6, %s3131_s22  ;;  %p3138_p10 = scmp.lt.u32.totalorder %s3131_s22, %s4080_s6 }
  0x41   : > { %p3134_p2 = pnand %p3132_p1, %p3496_p13 }
  0x43   : > { %p3135_p6 = pneg %p3134_p2 }
  0x45   : > { %p3140_p3 = pnand %p3138_p10, %p3135_p6 }
  0x47   : > { %3143 = shalt.err (!%p3140_p3)
}
  0x48   : > { %s3144_s25 = scalar_lea.vmem %s3484_s28, 512  ;;  %p3152_p12 = scmp.lt.s32.totalorder %s3484_s28, %s3484_s28 }
  0x49   : > { %p3145_p5 = scmp.ne.s32.totalorder %s3484_s28, %s3144_s25  ;;  %p3153_p0 = scmp.lt.s32.totalorder %s3144_s25, %s3144_s25 }
  0x4b   : > { %p3147_p7 = pnand %p3145_p5, %p3496_p13  ;;  %p3154_p1 = por %p3153_p0, %p3152_p12 }
  0x4d   : > { %p3148_p9 = pneg %p3147_p7 }
  0x4f   : > { %p3155_p2 = pnand %p3154_p1, %p3148_p9 }
  0x51   : > { %3158 = shalt.err (!%p3155_p2)
}
  0x52   : > { %2978 = dma.hbm_to_vmem [thread:$0]  (!%p3480_p11), %s4080_s6, 512, %s3484_s28, [#allocation12], %s3346_s11, %s3346_s11, %s3347_s12  }
  0x53   : > { %s4081_s7 = sld [smem:[#allocation26_spill]] }
  0x59   : > { %s3159_s20 = scalar_lea.hbm %s4081_s7, 512 }
  0x5a   : > { %p3160_p6 = scmp.ne.s32.totalorder %s4081_s7, %s3159_s20  ;;  %p3166_p5 = scmp.lt.u32.totalorder %s3159_s20, %s4081_s7 }
  0x5c   : > { %p3162_p10 = pnand %p3160_p6, %p3496_p13 }
  0x5e   : > { %p3163_p3 = pneg %p3162_p10 }
  0x60   : > { %p3168_p7 = pnand %p3166_p5, %p3163_p3 }
  0x62   : > { %3171 = shalt.err (!%p3168_p7)
}
  0x63   : > { %s3172_s25 = scalar_lea.vmem %s343_s30, 512  ;;  %p3180_p1 = scmp.lt.s32.totalorder %s343_s30, %s343_s30 }
  0x64   : > { %p3173_p9 = scmp.ne.s32.totalorder %s343_s30, %s3172_s25  ;;  %p3181_p2 = scmp.lt.s32.totalorder %s3172_s25, %s3172_s25 }
  0x66   : > { %p3175_p12 = pnand %p3173_p9, %p3496_p13  ;;  %p3182_p4 = por %p3181_p2, %p3180_p1 }
  0x68   : > { %p3176_p0 = pneg %p3175_p12 }
  0x6a   : > { %p3183_p8 = pnand %p3182_p4, %p3176_p0 }
  0x6c   : > { %3186 = shalt.err (!%p3183_p8)
}
  0x6d   : > { %2981 = dma.hbm_to_vmem [thread:$0]  (!%p3480_p11), %s4081_s7, 512, %s343_s30, [#allocation12], %s3346_s11, %s3346_s11, %s3347_s12  }
  0x6e   : > { %s49_s13 = sadd.s32 1, %s3329_s15  ;;  %s42_s26 = sadd.s32 1, %s3337_s17 }
  0x6f   : > { %p56_p4 = scmp.ne.s32.totalorder %s3329_s15, %s3325_s14  ;;  %p44_p8 = scmp.ge.s32.totalorder %s42_s26, 2 }
  0x70   : > { %p57_p13 = scmp.eq.s32.totalorder %s3341_s18, 0  ;;  %p4082_p6 = scmp.eq.s32.totalorder %s3450_s19, 1 }
  0x71   : > { %p2996_p3 = scmp.lt.s32.totalorder %s3341_s18, 2  ;;  %s4106_s26 = smov (%p44_p8, %s42_s26), 0 }
  0x72   : > { %p3575_p10 = por %p4082_p6, %p56_p4  ;;  %p58_p5 = por %p57_p13, %p56_p4 }
  0x73   : > { %s362_s10 = sand.u32 1, %s3329_s15   ;;  %s46_s16 = ssub.s32 %s3337_s17, %s4106_s26 }
  0x74   : > { %s4083_s8 = scalar_select %p3575_p10, 1, 0 }
  0x75   : > { %p47_p11 = scmp.eq.s32.totalorder %s46_s16, 0  ;;  %s3585_s30 = sshll.u32 %s362_s10, 3 }
  0x76   : > { %s2634_s11 = sshll.u32 %s3337_s17, 7  ;;  %s366_s29 = scalar_lea.vmem [#allocation5], %s3585_s30 }
  0x77   : > { %s3589_s12 = scalar_select %p47_p11, %s3329_s15, %s49_s13  }
  0x78   : > { %s3594_s27 = scalar_lea.hbm %s4045_s0, %s2634_s11  ;;  %s373_s22 = sshll.u32 %s366_s29, 4  ;;  %s3597_s22 = int_to_ptr.vmem [resolvable:$true] %s373_s22 }
  0x79   : > { %p3601_p7 = pnand %p2996_p3, %p58_p5  ;;  %s3608_s13 = scalar_lea.hbm %s4046_s1, %s2634_s11 }
  0x7a   : > { %s380_s16 = sand.u32 1, %s3341_s18   ;;  %s363_s20 = scalar_lea.sflag [#allocation6], %s362_s10 }
  0x7b   : > { %s3187_s24 = scalar_lea.hbm %s3594_s27, 128  ;;  %p3189_p12 = pneg %p3601_p7 }
  0x7c   : > { %p3188_p9 = scmp.ne.s32.totalorder %s3594_s27, %s3187_s24  ;;  %s3192_s6 = scalar_lea.hbm %s4045_s0, 256 }
  0x7d   : > { %p3193_p2 = scmp.lt.u32.totalorder %s3594_s27, %s4045_s0  ;;  %p3194_p4 = scmp.lt.u32.totalorder %s3192_s6, %s3187_s24 }
  0x7e   : > { %p3190_p0 = pnand %p3189_p12, %p3188_p9  ;;  %p3196_p13 = scmp.lt.u32.totalorder %s3187_s24, %s3594_s27 }
  0x7f   : > { %p3195_p8 = por %p3194_p4, %p3193_p2 }
  0x80   : > { %p3191_p1 = pneg %p3190_p0 }
  0x81   : > { %p3197_p6 = por %p3196_p13, %p3195_p8 }
  0x83   : > { %p3198_p3 = pnand %p3197_p6, %p3191_p1 }
  0x85   : > { %3201 = shalt.err (!%p3198_p3)
}
  0x86   : > { %s3202_s10 = scalar_lea.vmem %s3597_s22, 128  ;;  %s3348_s4 = smov [#allocation5]  }
  0x87   : > { %p3203_p5 = scmp.ne.s32.totalorder %s3597_s22, %s3202_s10  ;;  %s3207_s11 = sshll.u32 %s3348_s4, 4  ;;  %s3208_s11 = int_to_ptr.vmem [resolvable:$false] %s3207_s11 }
  0x88   : > { %s3209_s7 = scalar_lea.vmem %s3208_s11, 256  ;;  %p3210_p0 = scmp.lt.s32.totalorder %s3597_s22, %s3208_s11 }
  0x89   : > { %p3205_p11 = pnand %p3203_p5, %p3189_p12  ;;  %p3211_p2 = scmp.lt.s32.totalorder %s3209_s7, %s3202_s10 }
  0x8b   : > { %p3206_p9 = pneg %p3205_p11  ;;  %p3212_p4 = por %p3211_p2, %p3210_p0 }
  0x8d   : > { %p3213_p8 = pnand %p3212_p4, %p3206_p9 }
  0x8f   : > { %3216 = shalt.err (!%p3213_p8)
}
  0x90   : > { %2985 = dma.hbm_to_vmem [thread:$0]  (!%p3601_p7), %s3594_s27, 128, %s3597_s22, %s363_s20  }
  0x91   : > { %s384_s6 = scalar_lea.vmem [#allocation8], %s3585_s30  ;;  %s381_s24 = scalar_lea.sflag [#allocation9], %s380_s16 }
  0x92   : > { %s391_s5 = sshll.u32 %s384_s6, 4  ;;  %s3217_s29 = scalar_lea.hbm %s3608_s13, 128  ;;  %s392_s5 = int_to_ptr.vmem [resolvable:$true] %s391_s5 }
  0x93   : > { %p3218_p1 = scmp.ne.s32.totalorder %s3608_s13, %s3217_s29  ;;  %s3222_s4 = scalar_lea.hbm %s4046_s1, 256 }
  0x94   : > { %p3223_p3 = scmp.lt.u32.totalorder %s3608_s13, %s4046_s1  ;;  %p3224_p5 = scmp.lt.u32.totalorder %s3222_s4, %s3217_s29 }
  0x95   : > { %p3220_p13 = pnand %p3218_p1, %p3189_p12  ;;  %p3226_p9 = scmp.lt.u32.totalorder %s3217_s29, %s3608_s13 }
  0x96   : > { %p3225_p11 = por %p3224_p5, %p3223_p3 }
  0x97   : > { %p3221_p6 = pneg %p3220_p13 }
  0x98   : > { %p3227_p0 = por %p3226_p9, %p3225_p11 }
  0x9a   : > { %p3228_p2 = pnand %p3227_p0, %p3221_p6 }
  0x9c   : > { %3231 = shalt.err (!%p3228_p2)
}
  0x9d   : > { %s3232_s30 = scalar_lea.vmem %s392_s5, 128  ;;  %s3349_s27 = smov [#allocation8]  }
  0x9e   : > { %p3233_p4 = scmp.ne.s32.totalorder %s392_s5, %s3232_s30  ;;  %s3237_s22 = sshll.u32 %s3349_s27, 4  ;;  %s3238_s22 = int_to_ptr.vmem [resolvable:$false] %s3237_s22 }
  0x9f   : > { %s3239_s16 = scalar_lea.vmem %s3238_s22, 256  ;;  %p3240_p13 = scmp.lt.s32.totalorder %s392_s5, %s3238_s22 }
  0xa0   : > { %p3235_p8 = pnand %p3233_p4, %p3189_p12  ;;  %p3241_p10 = scmp.lt.s32.totalorder %s3239_s16, %s3232_s30 }
  0xa2   : > { %p3236_p1 = pneg %p3235_p8  ;;  %p3242_p3 = por %p3241_p10, %p3240_p13 }
  0xa4   : > { %p3243_p5 = pnand %p3242_p3, %p3236_p1 }
  0xa6   : > { %3246 = shalt.err (!%p3243_p5)
}
  0xa7   : > { %2988 = dma.hbm_to_vmem [thread:$0]  (!%p3601_p7), %s3608_s13, 128, %s392_s5, %s381_s24  }
  0xa8   : > { %p4085_p6 = scmp.ne.s32.totalorder %s4076_s23, 0 }
  0xa9   : > { %s3661_s20 = sand.u32 (!%p4085_p6), 1, %s3325_s14   ;;  %p4086_p10 = scmp.ne.s32.totalorder (!%p4085_p6), %s4073_s21, 0 }
  0xaa   : > { %400 = sbr.rel (%p4085_p6) target bundleno = 3610 (0xe1a), region = 60  ;;  %s3664_s6 = sshll.u32 (!%p4085_p6), %s3661_s20, 3 }
  0xab   : > { %s403_s29 = scalar_lea.sflag (!%p4085_p6), [#allocation6], %s3661_s20  ;;  %s406_s28 = scalar_lea.vmem (!%p4085_p6), [#allocation5], %s3664_s6 }
  0xb1   : > { %3300 = dma.done.wait (%p4086_p10), %s403_s29, 128  }
  0xb2   : > { %3302 = vsyncadd (%p4086_p10), %s403_s29, 4294967168  ;;  %s411_s23 = sand.u32 1, %s3450_s19   ;;  %s415_s13 = scalar_lea.vmem [#allocation8], %s3664_s6 }
  0xb3   : > { %s412_s25 = scalar_lea.sflag [#allocation9], %s411_s23 }
  0xb4   : > { %3304 = dma.done.wait (%p4086_p10), %s412_s25, 128  }
  0xb5   : > { %3306 = vsyncadd (%p4086_p10), %s412_s25, 4294967168  ;;  %p4087_p7 = scmp.eq.s32.totalorder %s3450_s19, 0 }
  0xb7   : > { %3308 = dma.done.wait (%p4087_p7), [#allocation9], 256   ;;  %p4088_p12 = pmov %p4087_p7 }
  0xb8   : > { %p4089_p11 = pmov %p4087_p7 }
  0xb9   : > { %3310 = vsyncadd (%p4088_p12), [#allocation9], 4294967040 }
  0xba   : > { %3312 = dma.done.wait (%p4089_p11), [#allocation12], 1024   ;;  %p4090_p9 = pmov %p4087_p7 }
  0xbb   : > { %v3350_v0 = vmov 0.0|0.0   ;;  %vm3351_vm0 = vmmov 0   ;;  %v3352_v1 = vmov 0.0   ;;  %v476_v2 = vld [vmem:[%s4048_s3] sm:$0xff]  ;;  %v477_v3 = vld [vmem:[%s4048_s3 + $0x8] sm:$0xff]  ;;  %v478_v4 = vld [vmem:[%s4048_s3 + $0x10] sm:$0xff]  ;;  %v480_v19 = vlaneseq }
  0xbc   : > { %3314 = vsyncadd (%p4090_p9), [#allocation12], 4294966272  ;;  %2909 = vmatprep.subr.bf16.mxu0 %v3350_v0  ;;  %2756 = vmatprep.mubr.msk.f32.mxu0 %vm3351_vm0, %v3352_v1  ;;  %v2910_v5 = vpack.c.bf16 %v477_v3, %v476_v2  ;;  %v479_v6 = vld [vmem:[%s4048_s3 + $0x18] sm:$0xff]  ;;  %v645_v7 = vld [vmem:[%s4047_s2] sm:$0xff]  ;;  %vm484_vm1 = vcmask 261120   ;;  %vm567_vm2 = vcmask 130048  }
  0xbd   : > { %2918 = vmatprep.subr.bf16.mxu1 %v3350_v0  ;;  %2774 = vmatprep.mubr.msk.f32.mxu1 %vm3351_vm0, %v3352_v1  ;;  %v646_v8 = vld [vmem:[%s4047_s2 + $0x8] sm:$0xff]  ;;  %v647_v9 = vld [vmem:[%s4047_s2 + $0x10] sm:$0xff]  ;;  %v648_v10 = vld [vmem:[%s4047_s2 + $0x18] sm:$0xff]  ;;  %v2913_v11 = vpack.c.bf16 %v479_v6, %v478_v4  ;;  %v3737_v20 = vshrl.u32 %v480_v19, 7  ;;  %vm558_vm3 = vcmask 523264   ;;  %vm728_vm4 = vcmask 64512  }
  0xbe   : > { %2911 = vmatpush3.bf16.msra.mxu0 %v2910_v5  ;;  %v2919_v12 = vpack.c.bf16 %v646_v8, %v645_v7  ;;  %v2922_v13 = vpack.c.bf16 %v648_v10, %v647_v9  ;;  %v3720_v14 = vld [vmem:[%s406_s28] sm:$0xff]  ;;  %v560_v18 = vld [vmem:[%s415_s13] sm:$0xff]  ;;  %s3353_s13 = smov 112   ;;  %s3354_s24 = smov 120   ;;  %vm1064_vm5 = vcmask 130112   ;;  %vm1237_vm6 = vcmask 195712  }
  0xbf   : > { %2912 = vmatprep.subr.bf16.mxu0 %v3350_v0  ;;  %v561_v15 = vld [vmem:[#allocation10] sm:$0xff]  ;;  %v562_v16 = vld [vmem:[#allocation10 + $0x8] sm:$0xff]  ;;  %v482_v21 = vsub.s32 1, %v3737_v20  ;;  %v651_v28 = vsub.s32 0, %v3737_v20  ;;  %s3355_s19 = smov 104   ;;  %v565_v33 = vsub.s32 2, %v3737_v20 }
  0xc0   : > { %2920 = vmatpush3.bf16.msra.mxu1 %v2919_v12  ;;  %v2916_v17 = vpack.c.bf16 %v562_v16, %v561_v15  ;;  %v3743_v22 = vld [vmem:[%s4054_s9] sm:$0xff]  ;;  %s3356_s10 = smov 96   ;;  %s3357_s4 = smov 80   ;;  %vm1410_vm7 = vcmask 261312  }
  0xc1   : > { %2921 = vmatprep.subr.bf16.mxu1 %v3350_v0  ;;  %v483_v23 = vrot.slane %v3743_v22, %v482_v21  ;;  %v652_v30 = vrot.slane %v3743_v22, %v651_v28  ;;  %v566_v34 = vrot.slane %v3743_v22, %v565_v33  ;;  %s3358_s11 = smov 72   ;;  %s3359_s7 = smov 88  }
  0xc2   : > { %2914 = vmatpush3.bf16.msra.mxu0 %v2913_v11  ;;  %s4091_s22 = sld [smem:[#allocation24_spill]]  ;;  %s3360_s5 = smov 8  }
  0xc3   : > { %2915 = vmatprep.subr.bf16.mxu0 %v3350_v0  ;;  %s3361_s30 = smov 16   ;;  %s3362_s27 = smov 24  }
  0xc4   : > { %2923 = vmatpush3.bf16.msra.mxu1 %v2922_v13  ;;  %s4094_s25 = sld [smem:[#allocation28_spill]]  ;;  %s2480_s28 = scalar_lea.sflag [#allocation7], %s3661_s20 }
  0xc5   : > { %2757 = vmatmul.mubr.msk.f32.vlgmr.msra.gmra.mrb[0].mxu0 %vm484_vm1, %v3720_v14  ;;  %2787 = vmatprep.subr.mxu1 %v3352_v1  ;;  %p4095_p2 = scmp.ne.s32.totalorder %s4083_s8, 0 }
  0xc6   : > { %2763 = vmatprep.mubr.msk.f32.mxu0 %vm3351_vm0, %v3352_v1  ;;  %2917 = vmatpush3.bf16.msra.mxu0 %v2916_v17 }
  0xc7   : > { %2775 = vmatmul.mubr.msk.f32.vlgmr.msra.gmra.mrb[0].mxu1 %vm484_vm1, %v3720_v14  ;;  %2777 = vmatprep.subr.mxu0 %v3352_v1 }
  0xc8   : > { %2789 = vmatprep.mubr.msk.f32.mxu1 %vm3351_vm0, %v3352_v1 }
  0xc9   : > { %2764 = vmatmul.mubr.msk.f32.vlgmr.msra.gmra.mrb[2].mxu0 %vm567_vm2, %v560_v18 }
  0xca   : > { %2779 = vmatprep.mubr.msk.f32.mxu0 %vm3351_vm0, %v3352_v1 }
 0x198   : > { %v554_v24 = vpop.f32.mrb[0].mxu0 }
 0x199   : > { %v555_v25 = vadd.f32 %v554_v24, %v483_v23  ;;  %v2758_v26 = vpop.f32.mrb[1].mxu0 }
 0x19a   : > { %v723_v27 = vpop.f32.mrb[0].mxu1 }
 0x19b   : > { %559 = vst.msk [vmem:[#allocation2] sm:$0xff] %vm558_vm3, %v555_v25  ;;  %v2776_v29 = vpop.f32.mrb[1].mxu1  ;;  %v3755_v32 = vadd.f32 %v723_v27, %v652_v30 }
 0x19c   : > { %v637_v35 = vpop.f32.mrb[2].mxu0 }
 0x19d   : > { %v638_v36 = vadd.f32 %v637_v35, %v566_v34  ;;  %v2765_v37 = vpop.f32.mrb[3].mxu0 }
 0x19f   : > { %641 = vst.msk [vmem:[#allocation3] sm:$0xff] %vm558_vm3, %v638_v36 }
 0x1a2   : > { %v3753_v31 = vld [vmem:[#allocation2] sm:$0xff] }
 0x1a3   : > { %1070 = vrot.lane.b32.xlu1 %v3753_v31, %s3353_s13  ;;  %897 = vrot.lane.b32.xlu0 %v3753_v31, %s3354_s24 }
 0x1a4   : > { %2778 = vmatpush3.xpose.msk.msra.mxu0 %vm728_vm4, %v3753_v31 }
 0x1a5   : > { %2782 = vmatprep.subr.mxu0 %v3352_v1 }
 0x1a6   : > { %v3828_v37 = vld [vmem:[#allocation3] sm:$0xff] }
 0x1a7   : > { %2780 = vmatmul.mubr.msk.f32.vlgmr.msra.gmra.mrb[4].mxu0 %vm728_vm4, %v3755_v32  ;;  %1067 = vrot.lane.b32.xlu1 %v3755_v32, %s3353_s13 }
 0x1a8   : > { %894 = vrot.lane.b32.xlu0 %v3755_v32, %s3354_s24  ;;  %2784 = vmatprep.mubr.msk.f32.mxu0 %vm3351_vm0, %v3352_v1 }
 0x1ab   : > { %1240 = vrot.lane.b32.xlu1 %v3755_v32, %s3355_s19 }
 0x1ac   : > { %1243 = vrot.lane.b32.xlu0 %v3753_v31, %s3355_s19 }
 0x215   : > { %v898_v38 = vpop.permute.xlu0 %897  ;;  %v1071_v39 = vpop.permute.xlu1 %1070 }
 0x216   : > { %2788 = vmatpush3.xpose.msk.msra.mxu1 %vm728_vm4, %v898_v38 }
 0x217   : > { %2797 = vmatprep.subr.mxu1 %v3352_v1 }
 0x219   : > { %v1068_v41 = vpop.permute.xlu1 %1067 }
 0x21a   : > { %v895_v40 = vpop.permute.xlu0 %894 }
 0x21b   : > { %2790 = vmatmul.mubr.msk.f32.vlgmr.msra.gmra.mrb[2].mxu1 %vm728_vm4, %v895_v40  ;;  %v1413_v40 = vld [vmem:[%s4091_s22] sm:$0xff] }
 0x21c   : > { %2798 = vmatpush3.xpose.msk.msra.mxu1 %vm728_vm4, %v1071_v39  ;;  %2799 = vmatprep.mubr.msk.f32.mxu1 %vm3351_vm0, %v3352_v1 }
 0x21d   : > { %2807 = vmatprep.subr.mxu1 %v3352_v1  ;;  %v1241_v43 = vpop.permute.xlu1 %1240 }
 0x21e   : > { %v1244_v42 = vpop.permute.xlu0 %1243 }
 0x21f   : > { %2800 = vmatmul.mubr.msk.f32.vlgmr.msra.gmra.mrb[4].mxu1 %vm728_vm4, %v1068_v41  ;;  %v1414_v41 = vld [vmem:[%s4091_s22 + $0x8] sm:$0xff] }
 0x220   : > { %2808 = vmatpush3.xpose.msk.msra.mxu1 %vm728_vm4, %v1244_v42  ;;  %2809 = vmatprep.mubr.msk.f32.mxu1 %vm3351_vm0, %v3352_v1  ;;  %v2925_v42 = vpack.c.bf16 %v1414_v41, %v1413_v40 }
 0x221   : > { %2924 = vmatprep.subr.bf16.mxu1 %v3350_v0 }
 0x223   : > { %2810 = vmatmul.mubr.msk.f32.vlgmr.msra.gmra.mrb[6].mxu1 %vm728_vm4, %v1241_v43  ;;  %v1415_v43 = vld [vmem:[%s4091_s22 + $0x10] sm:$0xff] }
 0x224   : > { %2825 = vmatprep.mubr.msk.f32.mxu1 %vm3351_vm0, %v3352_v1  ;;  %2926 = vmatpush3.bf16.msra.mxu1 %v2925_v42 }
 0x225   : > { %2927 = vmatprep.subr.bf16.mxu1 %v3350_v0 }
 0x27a   : > { %v801_v44 = vpop.f32.mrb[4].mxu0 }
 0x27b   : > { %v2781_v45 = vpop.f32.mrb[5].mxu0  ;;  %v805_v46 = vsel %vm728_vm4, %v801_v44, -inf }
 0x27c   : > { %806 = vmax.xlane.f32.xlu0 %v805_v46 }
 0x2ee   : > { %v969_v47 = vpop.f32.mrb[2].mxu1 }
 0x2ef   : > { %v2791_v48 = vpop.f32.mrb[3].mxu1  ;;  %v973_v49 = vsel %vm728_vm4, %v969_v47, -inf }
 0x2f0   : > { %974 = vmax.xlane.f32.xlu1 %v973_v49 }
 0x2f2   : > { %v1142_v50 = vpop.f32.mrb[4].mxu1 }
 0x2f3   : > { %v2801_v51 = vpop.f32.mrb[5].mxu1  ;;  %v1146_v52 = vsel %vm728_vm4, %v1142_v50, -inf }
 0x2f4   : > { %1147 = vmax.xlane.f32.xlu0 %v1146_v52 }
 0x2f6   : > { %v1315_v53 = vpop.f32.mrb[6].mxu1 }
 0x2f7   : > { %v2811_v54 = vpop.f32.mrb[7].mxu1  ;;  %v1319_v55 = vsel %vm728_vm4, %v1315_v53, -inf }
 0x2f8   : > { %1320 = vmax.xlane.f32.xlu0 %v1319_v55 }
 0x301   : > { %816 = vrot.lane.b32.xlu1 %v3753_v31, %s3356_s10 }
 0x309   : > { %v807_v56 = vpop.xlane.xlu0 %806 }
 0x30a   : > { %v808_v57 = vsub.f32 %v801_v44, %v807_v56  ;;  %v1416_v44 = vld [vmem:[%s4091_s22 + $0x18] sm:$0xff] }
 0x30b   : > { %v2928_v45 = vpack.c.bf16 %v1416_v44, %v1415_v43 }
 0x30c   : > { %v809_v58 = vmul.f32 1.442695, %v808_v57 }
 0x30d   : > { %2929 = vmatpush3.bf16.msra.mxu1 %v2928_v45 }
 0x30e   : > { %3067 = vpow2.f32 %v809_v58  ;;  %2838 = vmatprep.subr.mxu1 %v3352_v1 }
 0x318   : > { %v3068_v59 = vpop.eup %3067 }
 0x319   : > { %v811_v60 = vsel %vm728_vm4, %v3068_v59, 0.0 }
 0x325   : > { %812 = vadd.xlane.f32.xlu1 %v811_v60 }
 0x37d   : > { %v975_v61 = vpop.xlane.xlu1 %974 }
 0x37e   : > { %v976_v62 = vsub.f32 %v969_v47, %v975_v61 }
 0x380   : > { %v977_v63 = vmul.f32 1.442695, %v976_v62 }
 0x381   : > { %v817_v2 = vpop.permute.xlu1 %816  ;;  %v1148_v3 = vpop.xlane.xlu0 %1147 }
 0x382   : > { %3069 = vpow2.f32 %v977_v63  ;;  %v1149_v4 = vsub.f32 %v1142_v50, %v1148_v3  ;;  %2783 = vmatpush3.msra.mxu0 %v817_v2 }
 0x383   : > { %2792 = vmatprep.subr.mxu0 %v3352_v1 }
 0x384   : > { %v1150_v5 = vmul.f32 1.442695, %v1149_v4 }
 0x385   : > { %v1321_v6 = vpop.xlane.xlu0 %1320 }
 0x386   : > { %3071 = vpow2.f32 %v1150_v5  ;;  %v1322_v7 = vsub.f32 %v1315_v53, %v1321_v6 }
 0x388   : > { %v1323_v8 = vmul.f32 1.442695, %v1322_v7 }
 0x38a   : > { %3073 = vpow2.f32 %v1323_v8 }
 0x38c   : > { %v3070_v9 = vpop.eup %3069 }
 0x38d   : > { %v979_v10 = vsel %vm728_vm4, %v3070_v9, 0.0 }
 0x38e   : > { %980 = vadd.xlane.f32.xlu0 %v979_v10 }
 0x390   : > { %v3072_v11 = vpop.eup %3071 }
 0x391   : > { %v1152_v12 = vsel %vm728_vm4, %v3072_v11, 0.0 }
 0x392   : > { %1153 = vadd.xlane.f32.xlu1 %v1152_v12 }
 0x394   : > { %v3074_v13 = vpop.eup %3073 }
 0x395   : > { %v1325_v15 = vsel %vm728_vm4, %v3074_v13, 0.0 }
 0x396   : > { %1326 = vadd.xlane.f32.xlu0 %v1325_v15 }
 0x3a3   : > { %1157 = vrot.lane.b32.xlu1 %v3753_v31, %s3357_s4 }
 0x3a7   : > { %1330 = vrot.lane.b32.xlu1 %v3753_v31, %s3358_s11 }
 0x3ac   : > { %984 = vrot.lane.b32.xlu0 %v3753_v31, %s3359_s7 }
 0x3b2   : > { %v813_v16 = vpop.xlane.xlu1 %812 }
 0x3b3   : > { %3075 = vrcp.f32 %v813_v16 }
 0x3bd   : > { %v3076_v17 = vpop.eup %3075 }
 0x3be   : > { %v815_v18 = vmul.f32 %v3076_v17, %v3068_v59 }
 0x3c0   : > { %2785 = vmatmul.mubr.msk.f32.vlgmr.msra.gmra.mrb[6].mxu0 %vm728_vm4, %v815_v18 }
 0x3c1   : > { %2794 = vmatprep.mubr.msk.f32.mxu0 %vm3351_vm0, %v3352_v1 }
 0x41b   : > { %v981_v19 = vpop.xlane.xlu0 %980 }
 0x41c   : > { %3077 = vrcp.f32 %v981_v19 }
 0x41f   : > { %v1154_v23 = vpop.xlane.xlu1 %1153 }
 0x420   : > { %3079 = vrcp.f32 %v1154_v23 }
 0x423   : > { %v1327_v24 = vpop.xlane.xlu0 %1326  ;;  %v1158_v27 = vpop.permute.xlu1 %1157 }
 0x424   : > { %3081 = vrcp.f32 %v1327_v24 }
 0x426   : > { %v3078_v25 = vpop.eup %3077 }
 0x427   : > { %v983_v26 = vmul.f32 %v3078_v25, %v3070_v9  ;;  %v985_v29 = vpop.permute.xlu0 %984  ;;  %v1331_v34 = vpop.permute.xlu1 %1330 }
 0x428   : > { %2793 = vmatpush3.msra.mxu0 %v985_v29 }
 0x429   : > { %2795 = vmatmul.mubr.msk.f32.vlgmr.msra.gmra.mrb[8].mxu0 %vm728_vm4, %v983_v26  ;;  %2802 = vmatprep.subr.mxu0 %v3352_v1 }
 0x42a   : > { %v3080_v30 = vpop.eup %3079  ;;  %2803 = vmatpush3.msra.mxu0 %v1158_v27  ;;  %2804 = vmatprep.mubr.msk.f32.mxu0 %vm3351_vm0, %v3352_v1 }
 0x42b   : > { %v1156_v31 = vmul.f32 %v3080_v30, %v3072_v11  ;;  %2812 = vmatprep.subr.mxu0 %v3352_v1 }
 0x42d   : > { %2805 = vmatmul.mubr.msk.f32.vlgmr.msra.gmra.mrb[10].mxu0 %vm728_vm4, %v1156_v31 }
 0x42e   : > { %v3082_v35 = vpop.eup %3081  ;;  %2813 = vmatpush3.msra.mxu0 %v1331_v34  ;;  %2814 = vmatprep.mubr.msk.f32.mxu0 %vm3351_vm0, %v3352_v1 }
 0x42f   : > { %v1329_v36 = vmul.f32 %v3082_v35, %v3074_v13  ;;  %2828 = vmatprep.subr.mxu0 %v3352_v1 }
 0x431   : > { %2815 = vmatmul.mubr.msk.f32.vlgmr.msra.gmra.mrb[12].mxu0 %vm728_vm4, %v1329_v36 }
 0x432   : > { %2830 = vmatprep.mubr.msk.f32.mxu0 %vm3351_vm0, %v3352_v1 }
 0x435   : > { %2829 = vmatpush3.xpose.msk.msra.mxu0 %vm728_vm4, %v3828_v37 }
 0x436   : > { %2833 = vmatprep.subr.mxu0 %v3352_v1 }
 0x493   : > { %v888_v38 = vpop.f32.mrb[6].mxu0 }
 0x494   : > { %892 = vst.msk [vmem:[#allocation4] sm:$0xff] %vm728_vm4, %v888_v38  ;;  %v2786_v39 = vpop.f32.mrb[7].mxu0 }
 0x4fc   : > { %v1056_v46 = vpop.f32.mrb[8].mxu0 }
 0x4fd   : > { %1061 = vrot.lane.b32.xlu0 %v1056_v46, %s3360_s5  ;;  %v2796_v47 = vpop.f32.mrb[9].mxu0 }
 0x500   : > { %v1229_v48 = vpop.f32.mrb[10].mxu0 }
 0x501   : > { %1234 = vrot.lane.b32.xlu1 %v1229_v48, %s3361_s30  ;;  %v2806_v49 = vpop.f32.mrb[11].mxu0 }
 0x504   : > { %v1402_v50 = vpop.f32.mrb[12].mxu0 }
 0x505   : > { %1495 = vrot.lane.b32.xlu1 %v3755_v32, %s3356_s10  ;;  %1407 = vrot.lane.b32.xlu0 %v1402_v50, %s3362_s27  ;;  %v2816_v51 = vpop.f32.mrb[13].mxu0 }
 0x509   : > { %1661 = vrot.lane.b32.xlu1 %v3755_v32, %s3359_s7  ;;  %1664 = vrot.lane.b32.xlu0 %v3828_v37, %s3354_s24 }
 0x50d   : > { %1833 = vrot.lane.b32.xlu1 %v3755_v32, %s3357_s4  ;;  %1836 = vrot.lane.b32.xlu0 %v3828_v37, %s3353_s13 }
 0x511   : > { %2005 = vrot.lane.b32.xlu1 %v3755_v32, %s3358_s11  ;;  %2008 = vrot.lane.b32.xlu0 %v3828_v37, %s3355_s19  ;;  %s4092_s19 = sld [smem:[#allocation27_spill]] }
 0x56f   : > { %v1062_v52 = vpop.permute.xlu0 %1061 }
 0x570   : > { %1065 = vst.msk [vmem:[#allocation4] sm:$0xff] %vm1064_vm5, %v1062_v52 }
 0x573   : > { %v1235_v53 = vpop.permute.xlu1 %1234 }
 0x574   : > { %1238 = vst.msk [vmem:[#allocation4] sm:$0xff] %vm1237_vm6, %v1235_v53 }
 0x577   : > { %v1496_v54 = vpop.permute.xlu1 %1495  ;;  %v1408_v55 = vpop.permute.xlu0 %1407 }
 0x578   : > { %1411 = vst.msk [vmem:[#allocation4] sm:$0xff] %vm1410_vm7, %v1408_v55  ;;  %2831 = vmatmul.mubr.msk.f32.vlgmr.msra.gmra.mrb[14].mxu0 %vm728_vm4, %v1496_v54 }
 0x579   : > { %2835 = vmatprep.mubr.msk.f32.mxu0 %vm3351_vm0, %v3352_v1 }
 0x57b   : > { %v1665_v32 = vpop.permute.xlu0 %1664  ;;  %v1662_v56 = vpop.permute.xlu1 %1661 }
 0x57f   : > { %v1412_v57 = vld [vmem:[#allocation4] sm:$0xff]  ;;  %v1837_v58 = vpop.permute.xlu0 %1836  ;;  %v1834_v59 = vpop.permute.xlu1 %1833 }
 0x580   : > { %2826 = vmatmul.mubr.msk.f32.vlgmr.msra.gmra.mrb[8].mxu1 %vm484_vm1, %v1412_v57 }
 0x581   : > { %2839 = vmatpush3.xpose.msk.msra.mxu1 %vm728_vm4, %v1665_v32  ;;  %2840 = vmatprep.mubr.msk.f32.mxu1 %vm3351_vm0, %v3352_v1 }
 0x582   : > { %2848 = vmatprep.subr.mxu1 %v3352_v1 }
 0x583   : > { %v2009_v60 = vpop.permute.xlu0 %2008  ;;  %v2006_v61 = vpop.permute.xlu1 %2005 }
 0x584   : > { %2841 = vmatmul.mubr.msk.f32.vlgmr.msra.gmra.mrb[10].mxu1 %vm728_vm4, %v1662_v56 }
 0x585   : > { %2849 = vmatpush3.xpose.msk.msra.mxu1 %vm728_vm4, %v1837_v58  ;;  %2850 = vmatprep.mubr.msk.f32.mxu1 %vm3351_vm0, %v3352_v1 }
 0x586   : > { %2858 = vmatprep.subr.mxu1 %v3352_v1 }
 0x588   : > { %2851 = vmatmul.mubr.msk.f32.vlgmr.msra.gmra.mrb[12].mxu1 %vm728_vm4, %v1834_v59 }
 0x589   : > { %2859 = vmatpush3.xpose.msk.msra.mxu1 %vm728_vm4, %v2009_v60  ;;  %2860 = vmatprep.mubr.msk.f32.mxu1 %vm3351_vm0, %v3352_v1  ;;  %v2177_v60 = vld [vmem:[#allocation11] sm:$0xff] }
 0x58a   : > { %2930 = vmatprep.subr.bf16.mxu1 %v3350_v0 }
 0x58c   : > { %2861 = vmatmul.mubr.msk.f32.vlgmr.msra.gmra.mrb[14].mxu1 %vm728_vm4, %v2006_v61  ;;  %v2178_v61 = vld [vmem:[#allocation11 + $0x8] sm:$0xff] }
 0x58d   : > { %2876 = vmatprep.mubr.msk.f32.mxu1 %vm3351_vm0, %v3352_v1 }
 0x64b   : > { %v1568_v62 = vpop.f32.mrb[14].mxu0 }
 0x64c   : > { %v2832_v63 = vpop.f32.mrb[15].mxu0  ;;  %v1572_v2 = vsel %vm728_vm4, %v1568_v62, -inf }
 0x64d   : > { %1573 = vmax.xlane.f32.xlu0 %v1572_v2  ;;  %v2179_v63 = vld [vmem:[#allocation11 + $0x10] sm:$0xff]  ;;  %v2180_v2 = vld [vmem:[#allocation11 + $0x18] sm:$0xff] }
 0x653   : > { %v3890_v3 = vpop.f32.mrb[8].mxu1 }
 0x654   : > { %v2827_v4 = vpop.f32.mrb[9].mxu1 }
 0x655   : > { %v2934_v4 = vpack.c.bf16 %v2180_v2, %v2179_v63 }
 0x657   : > { %v1736_v5 = vpop.f32.mrb[10].mxu1 }
 0x658   : > { %v2842_v6 = vpop.f32.mrb[11].mxu1  ;;  %v1740_v7 = vsel %vm728_vm4, %v1736_v5, -inf }
 0x659   : > { %1741 = vmax.xlane.f32.xlu1 %v1740_v7 }
 0x65b   : > { %v1908_v8 = vpop.f32.mrb[12].mxu1 }
 0x65c   : > { %v2852_v9 = vpop.f32.mrb[13].mxu1  ;;  %v1912_v10 = vsel %vm728_vm4, %v1908_v8, -inf }
 0x65d   : > { %1913 = vmax.xlane.f32.xlu0 %v1912_v10 }
 0x65f   : > { %v2080_v11 = vpop.f32.mrb[14].mxu1 }
 0x660   : > { %v2862_v12 = vpop.f32.mrb[15].mxu1  ;;  %v2084_v13 = vsel %vm728_vm4, %v2080_v11, -inf }
 0x661   : > { %2085 = vmax.xlane.f32.xlu0 %v2084_v13  ;;  %v1419_v13 = vsub.s32 3, %v3737_v20 }
 0x6da   : > { %v1574_v15 = vpop.xlane.xlu0 %1573 }
 0x6db   : > { %v1575_v16 = vsub.f32 %v1568_v62, %v1574_v15  ;;  %v2931_v62 = vpack.c.bf16 %v2178_v61, %v2177_v60  ;;  %v2183_v15 = vsub.s32 4, %v3737_v20  ;;  %v2375_v60 = vld [vmem:[%s4092_s19 + $0x38] sm:$0xff] }
 0x6dd   : > { %v1576_v17 = vmul.f32 1.442695, %v1575_v16  ;;  %2932 = vmatpush3.bf16.msra.mxu1 %v2931_v62  ;;  %v1420_v16 = vrot.slane %v3743_v22, %v1419_v13  ;;  %v2292_v62 = vsub.s32 7, %v3737_v20 }
 0x6de   : > { %2933 = vmatprep.subr.bf16.mxu1 %v3350_v0 }
 0x6df   : > { %3083 = vpow2.f32 %v1576_v17  ;;  %v2184_v17 = vrot.slane %v3743_v22, %v2183_v15  ;;  %v2293_v63 = vrot.slane %v3743_v22, %v2292_v62 }
 0x6e1   : > { %2935 = vmatpush3.bf16.msra.mxu1 %v2934_v4 }
 0x6e2   : > { %2942 = vmatprep.subr.bf16.mxu1 %v3350_v0 }
 0x6e6   : > { %v1742_v18 = vpop.xlane.xlu1 %1741 }
 0x6e7   : > { %v1743_v19 = vsub.f32 %v1736_v5, %v1742_v18  ;;  %v1491_v18 = vadd.f32 %v3890_v3, %v1420_v16  ;;  %v2287_v3 = vld [vmem:[#allocation13 + $0x8] sm:$0xff] }
 0x6e9   : > { %v3084_v23 = vpop.eup %3083  ;;  %v1744_v24 = vmul.f32 1.442695, %v1743_v19 }
 0x6ea   : > { %v1914_v25 = vpop.xlane.xlu0 %1913  ;;  %v1578_v26 = vsel %vm728_vm4, %v3084_v23, 0.0 }
 0x6eb   : > { %3085 = vpow2.f32 %v1744_v24  ;;  %1579 = vadd.xlane.f32.xlu1 %v1578_v26  ;;  %v1915_v38 = vsub.f32 %v1908_v8, %v1914_v25  ;;  %v2258_v25 = vmul.f32 0.5, %v1491_v18 }
 0x6ed   : > { %v1916_v39 = vmul.f32 1.442695, %v1915_v38  ;;  %v2286_v38 = vld [vmem:[#allocation13] sm:$0xff] }
 0x6ee   : > { %v2086_v27 = vpop.xlane.xlu0 %2085 }
 0x6ef   : > { %v2087_v29 = vsub.f32 %v2080_v11, %v2086_v27 }
 0x6f1   : > { %v2088_v30 = vmul.f32 1.442695, %v2087_v29 }
 0x6f3   : > { %3087 = vpow2.f32 %v2088_v30 }
 0x6f4   : > { %3089 = vpow2.f32 %v1916_v39  ;;  %v2937_v39 = vpack.c.bf16 %v2287_v3, %v2286_v38 }
 0x6f5   : > { %v3086_v31 = vpop.eup %3085 }
 0x6f6   : > { %v1746_v34 = vsel %vm728_vm4, %v3086_v31, 0.0 }
 0x6f7   : > { %1747 = vadd.xlane.f32.xlu0 %v1746_v34 }
 0x6fc   : > { %1583 = vrot.lane.b32.xlu1 %v3828_v37, %s3356_s10 }
 0x6fd   : > { %v3088_v35 = vpop.eup %3087 }
 0x6fe   : > { %v2090_v36 = vsel %vm728_vm4, %v3088_v35, 0.0  ;;  %v3090_v40 = vpop.eup %3089 }
 0x6ff   : > { %2091 = vadd.xlane.f32.xlu0 %v2090_v36  ;;  %v1918_v41 = vsel %vm728_vm4, %v3090_v40, 0.0 }
 0x715   : > { %1751 = vrot.lane.b32.xlu0 %v3828_v37, %s3359_s7  ;;  %s468_s7 = scalar_lea.vmem [#allocation14], %s3664_s6  ;;  %s3363_s6 = smov [#allocation14]  }
 0x716   : > { %s2494_s16 = sshll.u32 %s468_s7, 4  ;;  %s3997_s16 = int_to_ptr.vmem [resolvable:$true] %s2494_s16 }
 0x720   : > { %1919 = vadd.xlane.f32.xlu1 %v1918_v41  ;;  %v2289_v41 = vld [vmem:[#allocation13 + $0x18] sm:$0xff] }
 0x731   : > { %1923 = vrot.lane.b32.xlu1 %v3828_v37, %s3357_s4  ;;  %s4093_s4 = sld [smem:[#allocation21_spill]] }
 0x735   : > { %2095 = vrot.lane.b32.xlu1 %v3828_v37, %s3358_s11 }
 0x737   : > { %s2676_s11 = sshll.u32 %s4093_s4, 7 }
 0x738   : > { %s3995_s21 = scalar_lea.hbm %s4094_s25, %s2676_s11 }
 0x778   : > { %v1580_v42 = vpop.xlane.xlu1 %1579 }
 0x779   : > { %3091 = vrcp.f32 %v1580_v42 }
 0x77c   : > { %v1584_v43 = vpop.permute.xlu1 %1583 }
 0x77d   : > { %2834 = vmatpush3.msra.mxu0 %v1584_v43  ;;  %v2369_v43 = vld [vmem:[%s4092_s19 + $0x8] sm:$0xff] }
 0x77e   : > { %2843 = vmatprep.subr.mxu0 %v3352_v1 }
 0x783   : > { %v3092_v44 = vpop.eup %3091 }
 0x784   : > { %v1582_v45 = vmul.f32 %v3092_v44, %v3084_v23  ;;  %v1748_v46 = vpop.xlane.xlu0 %1747  ;;  %v2370_v44 = vld [vmem:[%s4092_s19 + $0x10] sm:$0xff] }
 0x785   : > { %3093 = vrcp.f32 %v1748_v46  ;;  %v2371_v46 = vld [vmem:[%s4092_s19 + $0x18] sm:$0xff] }
 0x786   : > { %2836 = vmatmul.mubr.msk.f32.vlgmr.msra.gmra.mrb[16].mxu0 %vm728_vm4, %v1582_v45 }
 0x787   : > { %2845 = vmatprep.mubr.msk.f32.mxu0 %vm3351_vm0, %v3352_v1 }
 0x78c   : > { %v2092_v47 = vpop.xlane.xlu0 %2091 }
 0x78f   : > { %v3094_v48 = vpop.eup %3093 }
 0x790   : > { %v1750_v49 = vmul.f32 %v3094_v48, %v3086_v31  ;;  %v1752_v50 = vpop.permute.xlu0 %1751  ;;  %v2372_v48 = vld [vmem:[%s4092_s19 + $0x20] sm:$0xff] }
 0x791   : > { %2844 = vmatpush3.msra.mxu0 %v1752_v50 }
 0x792   : > { %2846 = vmatmul.mubr.msk.f32.vlgmr.msra.gmra.mrb[18].mxu0 %vm728_vm4, %v1750_v49  ;;  %2853 = vmatprep.subr.mxu0 %v3352_v1  ;;  %v2373_v49 = vld [vmem:[%s4092_s19 + $0x28] sm:$0xff] }
 0x793   : > { %2855 = vmatprep.mubr.msk.f32.mxu0 %vm3351_vm0, %v3352_v1  ;;  %v2949_v50 = vpack.c.bf16 %v2373_v49, %v2372_v48 }
 0x7ad   : > { %v1920_v37 = vpop.xlane.xlu1 %1919 }
 0x7ae   : > { %3095 = vrcp.f32 %v1920_v37 }
 0x7af   : > { %3097 = vrcp.f32 %v2092_v47  ;;  %v2946_v47 = vpack.c.bf16 %v2371_v46, %v2370_v44 }
 0x7b1   : > { %v1924_v51 = vpop.permute.xlu1 %1923 }
 0x7b2   : > { %2854 = vmatpush3.msra.mxu0 %v1924_v51 }
 0x7b3   : > { %2863 = vmatprep.subr.mxu0 %v3352_v1 }
 0x7b5   : > { %v2096_v55 = vpop.permute.xlu1 %2095 }
 0x7b8   : > { %v3096_v52 = vpop.eup %3095 }
 0x7b9   : > { %v1922_v53 = vmul.f32 %v3096_v52, %v3090_v40  ;;  %v3098_v54 = vpop.eup %3097  ;;  %v2288_v40 = vld [vmem:[#allocation13 + $0x10] sm:$0xff] }
 0x7ba   : > { %v2094_v32 = vmul.f32 %v3098_v54, %v3088_v35  ;;  %v2940_v42 = vpack.c.bf16 %v2289_v41, %v2288_v40  ;;  %v2283_v54 = vsub.s32 6, %v3737_v20 }
 0x7bb   : > { %2856 = vmatmul.mubr.msk.f32.vlgmr.msra.gmra.mrb[20].mxu0 %vm728_vm4, %v1922_v53  ;;  %v2278_v53 = vsub.s32 5, %v3737_v20 }
 0x7bc   : > { %2864 = vmatpush3.msra.mxu0 %v2096_v55  ;;  %2865 = vmatprep.mubr.msk.f32.mxu0 %vm3351_vm0, %v3352_v1 }
 0x7bd   : > { %2936 = vmatprep.subr.bf16.mxu0 %v3350_v0  ;;  %v2279_v55 = vrot.slane %v3743_v22, %v2278_v53 }
 0x7bf   : > { %2866 = vmatmul.mubr.msk.f32.vlgmr.msra.gmra.mrb[22].mxu0 %vm728_vm4, %v2094_v32 }
 0x7c0   : > { %2887 = vmatprep.mubr.msk.f32.mxu0 %vm3351_vm0, %v3352_v1  ;;  %2938 = vmatpush3.bf16.msra.mxu0 %v2937_v39 }
 0x7c1   : > { %2939 = vmatprep.subr.bf16.mxu0 %v3350_v0 }
 0x7c4   : > { %2941 = vmatpush3.bf16.msra.mxu0 %v2940_v42 }
 0x859   : > { %v1655_v56 = vpop.f32.mrb[16].mxu0 }
 0x85a   : > { %1659 = vst.msk [vmem:[#allocation4] sm:$0xff] %vm728_vm4, %v1655_v56  ;;  %v2837_v57 = vpop.f32.mrb[17].mxu0 }
 0x85b   : > { %v2284_v57 = vrot.slane %v3743_v22, %v2283_v54 }
 0x865   : > { %v1823_v58 = vpop.f32.mrb[18].mxu0 }
 0x866   : > { %1828 = vrot.lane.b32.xlu0 %v1823_v58, %s3360_s5  ;;  %v2847_v59 = vpop.f32.mrb[19].mxu0  ;;  %s3247_s5 = scalar_lea.vmem %s3997_s16, 128 }
 0x867   : > { %p3248_p0 = scmp.ne.s32.totalorder %s3997_s16, %s3247_s5 }
 0x869   : > { %p3249_p4 = pnand %p3248_p0, %p4095_p2 }
 0x86b   : > { %p3250_p8 = pneg %p3249_p4 }
 0x88e   : > { %v1995_v5 = vpop.f32.mrb[20].mxu0 }
 0x88f   : > { %2000 = vrot.lane.b32.xlu1 %v1995_v5, %s3361_s30  ;;  %v2857_v6 = vpop.f32.mrb[21].mxu0  ;;  %s3251_s30 = sshll.u32 %s3363_s6, 4  ;;  %s3252_s30 = int_to_ptr.vmem [resolvable:$false] %s3251_s30 }
 0x890   : > { %p3254_p1 = scmp.lt.s32.totalorder %s3997_s16, %s3252_s30 }
 0x892   : > { %v2167_v7 = vpop.f32.mrb[22].mxu0 }
 0x893   : > { %2172 = vrot.lane.b32.xlu0 %v2167_v7, %s3362_s27  ;;  %v2867_v8 = vpop.f32.mrb[23].mxu0  ;;  %v470_v7 = vld [vmem:[%s4054_s9 + $0x8] sm:$0x7]  ;;  %s3253_s27 = scalar_lea.vmem %s3252_s30, 256 }
 0x894   : > { %v2379_v8 = vrot.slane %v470_v7, %v651_v28  ;;  %p3255_p13 = scmp.lt.s32.totalorder %s3253_s27, %s3247_s5 }
 0x896   : > { %p3256_p3 = por %p3255_p13, %p3254_p1 }
 0x898   : > { %p3257_p5 = pnand %p3256_p3, %p3250_p8 }
 0x8d8   : > { %v1829_v9 = vpop.permute.xlu0 %1828 }
 0x8d9   : > { %1831 = vst.msk [vmem:[#allocation4] sm:$0xff] %vm1064_vm5, %v1829_v9 }
 0x901   : > { %v2001_v10 = vpop.permute.xlu1 %2000 }
 0x902   : > { %2003 = vst.msk [vmem:[#allocation4] sm:$0xff] %vm1237_vm6, %v2001_v10 }
 0x905   : > { %v2173_v11 = vpop.permute.xlu0 %2172 }
 0x906   : > { %2175 = vst.msk [vmem:[#allocation4] sm:$0xff] %vm1410_vm7, %v2173_v11 }
 0x90d   : > { %v2176_v12 = vld [vmem:[#allocation4] sm:$0xff] }
 0x90e   : > { %2877 = vmatmul.mubr.msk.f32.vlgmr.msra.gmra.mrb[16].mxu1 %vm484_vm1, %v2176_v12 }
 0x90f   : > { %2906 = vmatprep.mubr.msk.f32.mxu1 %vm3351_vm0, %v3352_v1 }
 0x9e1   : > { %v2254_v19 = vpop.f32.mrb[16].mxu1 }
 0x9e2   : > { %v2255_v23 = vadd.f32 %v2254_v19, %v2184_v17  ;;  %v2878_v24 = vpop.f32.mrb[17].mxu1 }
 0x9e3   : > { %v2471_v24 = vrot.slane %v470_v7, %v482_v21 }
 0x9e4   : > { %v2259_v26 = vmul.f32 0.5, %v2255_v23 }
 0x9e6   : > { %v2260_v27 = vadd.f32 %v2259_v26, %v2258_v25  ;;  %v2476_v26 = vrot.slane %v470_v7, %v565_v33 }
 0x9e8   : > { %v2261_v29 = vadd.f32 %v2260_v27, %v3720_v14  ;;  %v2368_v14 = vld [vmem:[%s4092_s19] sm:$0xff] }
 0x9e9   : > { %v2943_v45 = vpack.c.bf16 %v2369_v43, %v2368_v14 }
 0x9ea   : > { %v2262_v1 = vsel %vm484_vm1, %v2261_v29, 0.0 }
 0x9eb   : > { %2263 = vadd.xlane.f32.xlu1 %v2262_v1  ;;  %2944 = vmatpush3.bf16.msra.mxu1 %v2943_v45 }
 0x9ec   : > { %2945 = vmatprep.subr.bf16.mxu1 %v3350_v0 }
 0x9ef   : > { %2947 = vmatpush3.bf16.msra.mxu1 %v2946_v47 }
 0x9f0   : > { %2948 = vmatprep.subr.bf16.mxu1 %v3350_v0 }
 0x9f3   : > { %2950 = vmatpush3.bf16.msra.mxu1 %v2949_v50 }
 0x9f4   : > { %2951 = vmatprep.subr.bf16.mxu1 %v3350_v0  ;;  %v2374_v0 = vld [vmem:[%s4092_s19 + $0x30] sm:$0xff] }
 0x9f5   : > { %v2952_v61 = vpack.c.bf16 %v2375_v60, %v2374_v0 }
 0x9f7   : > { %2953 = vmatpush3.bf16.msra.mxu1 %v2952_v61 }
 0xa78   : > { %v2264_v30 = vpop.xlane.xlu1 %2263 }
 0xa79   : > { %v2266_v31 = vmul.f32 0.03125, %v2264_v30 }
 0xa7b   : > { %v2267_v34 = vsub.f32 %v2261_v29, %v2266_v31 }
 0xa7d   : > { %v2268_v35 = vmul.f32 %v2267_v34, %v2267_v34 }
 0xa7f   : > { %v2269_v36 = vsel %vm484_vm1, %v2268_v35, 0.0 }
 0xa80   : > { %2270 = vadd.xlane.f32.xlu0 %v2269_v36 }
 0xb0d   : > { %v2271_v37 = vpop.xlane.xlu0 %2270 }
 0xb0e   : > { %v2272_v51 = vmul.f32 0.03125, %v2271_v37 }
 0xb10   : > { %v2273_v52 = vadd.f32 1e-05, %v2272_v51 }
 0xb12   : > { %3099 = vrsqrt.f32 %v2273_v52 }
 0xb1c   : > { %v3100_v32 = vpop.eup %3099 }
 0xb1d   : > { %v2275_v56 = vmul.f32 %v3100_v32, %v2267_v34 }
 0xb1f   : > { %v2280_v58 = vmul.f32 %v2279_v55, %v2275_v56 }
 0xb21   : > { %v2285_v59 = vadd.f32 %v2284_v57, %v2280_v58 }
 0xb23   : > { %2888 = vmatmul.mubr.msk.f32.vlgmr.msra.gmra.mrb[24].mxu0 %vm484_vm1, %v2285_v59 }
 0xbf6   : > { %v2363_v2 = vpop.f32.mrb[24].mxu0 }
 0xbf7   : > { %v2364_v4 = vadd.f32 %v2363_v2, %v2293_v63  ;;  %v2889_v5 = vpop.f32.mrb[25].mxu0 }
 0xbf9   : > { %v2367_v6 = vmax.f32 %v2364_v4, 0.0 }
 0xbfb   : > { %2907 = vmatmul.mubr.msk.f32.vlgmr.msra.gmra.mrb[18].mxu1 %vm558_vm3, %v2367_v6 }
 0xcce   : > { %v2450_v9 = vpop.f32.mrb[18].mxu1 }
 0xccf   : > { %v2451_v10 = vadd.f32 %v2450_v9, %v2379_v8  ;;  %v2908_v11 = vpop.f32.mrb[19].mxu1 }
 0xcd1   : > { %v2454_v12 = vadd.f32 %v2451_v10, %v2285_v59 }
 0xcd3   : > { %v2455_v13 = vsel %vm484_vm1, %v2454_v12, 0.0 }
 0xcd4   : > { %2456 = vadd.xlane.f32.xlu0 %v2455_v13 }
 0xd61   : > { %v2457_v22 = vpop.xlane.xlu0 %2456 }
 0xd62   : > { %v2458_v15 = vmul.f32 0.03125, %v2457_v22 }
 0xd64   : > { %v2459_v16 = vsub.f32 %v2454_v12, %v2458_v15 }
 0xd66   : > { %v2460_v17 = vmul.f32 %v2459_v16, %v2459_v16 }
 0xd68   : > { %v2461_v18 = vsel %vm484_vm1, %v2460_v17, 0.0 }
 0xd69   : > { %2462 = vadd.xlane.f32.xlu1 %v2461_v18 }
 0xdf6   : > { %v2463_v19 = vpop.xlane.xlu1 %2462 }
 0xdf7   : > { %v2464_v23 = vmul.f32 0.03125, %v2463_v19 }
 0xdf9   : > { %v2465_v28 = vadd.f32 1e-05, %v2464_v23 }
 0xdfb   : > { %3101 = vrsqrt.f32 %v2465_v28 }
 0xe05   : > { %v3102_v25 = vpop.eup %3101 }
 0xe06   : > { %v2467_v27 = vmul.f32 %v3102_v25, %v2459_v16 }
 0xe08   : > { %v2472_v29 = vmul.f32 %v2471_v24, %v2467_v27 }
 0xe0a   : > { %v2477_v1 = vadd.f32 %v2476_v26, %v2472_v29 }
 0xe0c   : > { %2478 = vst.msk [vmem:[%s468_s7] sm:$0xff] %vm484_vm1, %v2477_v1 }
 0xe0d   : > { %3260 = shalt.err (!%p3257_p5)
}
 0xe0e   : > { %s3261_s20 = scalar_lea.hbm %s3995_s21, 128  ;;  %s3265_s10 = scalar_lea.hbm %s4094_s25, 256 }
 0xe0f   : > { %p3262_p6 = scmp.ne.s32.totalorder %s3995_s21, %s3261_s20  ;;  %p3266_p12 = scmp.lt.u32.totalorder %s3995_s21, %s4094_s25 }
 0xe10   : > { %p3267_p11 = scmp.lt.u32.totalorder %s3265_s10, %s3261_s20  ;;  %p3269_p0 = scmp.lt.u32.totalorder %s3261_s20, %s3995_s21 }
 0xe11   : > { %p3263_p10 = pnand %p3262_p6, %p4095_p2 }
 0xe12   : > { %p3268_p9 = por %p3267_p11, %p3266_p12 }
 0xe13   : > { %p3264_p7 = pneg %p3263_p10 }
 0xe14   : > { %p3270_p4 = por %p3269_p0, %p3268_p9 }
 0xe16   : > { %p3271_p8 = pnand %p3270_p4, %p3264_p7 }
 0xe18   : > { %3274 = shalt.err (!%p3271_p8)
}
 0xe19   : > { %2970 = dma.vmem_to_hbm [thread:$0]  (%p4095_p2), %s3997_s16, 128, %s3995_s21, %s2480_s28  }
 0xe1a PF: > { %s4096_s7 = sld [smem:[#allocation20_spill]]  ;;  %s4097_s29 = sld [smem:[#allocation22_spill]] }
 0xe1b   : > { %p4099_p13 = scmp.ge.s32.totalorder %s3341_s18, 2 }
 0xe20   : > { %s2506_s23 = sand.u32 1, %s4096_s7   ;;  %p4098_p1 = scmp.ne.s32.totalorder %s4097_s29, 0 }
 0xe21   : > { %s2507_s5 = scalar_lea.sflag [#allocation7], %s2506_s23 }
 0xe22   : > { %p2990_p3 = pnand %p4099_p13, %p4098_p1 }
 0xe24   : > { %3316 = dma.done.wait (!%p2990_p3), %s2507_s5, 128  }
 0xe25   : > { %3318 = vsyncadd (!%p2990_p3), %s2507_s5, 4294967168  ;;  %s30_s18 = sadd.s32 1, %s3341_s18   ;;  %s4100_s13 = smov %s3325_s14 }
 0xe26   : > { %p27_p5 = scmp.ge.s32.totalorder %s30_s18, 4   ;;  %s4101_s14 = smov %s3329_s15 }
 0xe27   : > { %s4102_s15 = smov %s3589_s12  ;;  %s4103_s16 = smov %s3337_s17 }
 0xe28   : > { %s4104_s17 = smov %s4106_s26  ;;  %29 = sbr.rel (!%p27_p5) target bundleno = 16 (0x10), region = 135 }
 0xe2f   :  { %2512 = vsyncpa [#allocation6], 1 }
 0xe30   :  { %2514 = vsyncpa [#allocation6 + $0x1], 1 }
 0xe31   :  { %2515 = vsyncpa [#allocation9], 1 }
 0xe32   :  { %2517 = vsyncpa [#allocation9 + $0x1], 1 }
 0xe33   :  { %2518 = vsyncpa [#allocation12], 1 }
 0xe34   :  { %2519 = vsyncpa [#allocation7], 1 }
 0xe35   :  { %2521 = vsyncpa [#allocation7 + $0x1], 1 }

</bundles_post_ra>
